<compile_context>
chip_gen: v5e
topology: v5e:2x2
jax: 0.10.0
libtpu: 0.0.40
codegen_flags: <defaults>
</compile_context>

<pallas_src>
import functools

import jax
import jax.numpy as jnp
from jax.experimental import pallas as pl
from jax.experimental.pallas import tpu as pltpu


# ----------------------------------------------------------------------------
# Fused kernel
# ----------------------------------------------------------------------------
def _safe_div(num, den):
    # Exact when den != 0; returns 0.0 (and never evaluates num/0) when den == 0.
    return jnp.where(den == 0.0, 0.0, num / jnp.where(den == 0.0, 1.0, den))


def _ssi_loss_kernel(pred_ref, tgt_ref, mask_ref, out_ref, *, alpha, scales):
    pred = pred_ref[...]          # (B, H, W) f32 — whole arrays resident in VMEM
    tgt = tgt_ref[...]
    mask = mask_ref[...]
    B, H, W = pred.shape
    inv_b = 1.0 / float(B)

    # Shared elementwise work (used by MSE and every gradient scale).
    diff = pred - tgt
    mdiff = mask * diff
    mask_total = jnp.sum(mask)    # shared by MSE and the scale-0 gradient term

    # ---- MSELoss, reduction_batch_based:
    #      sum_b sum(mask * res^2) / sum_b (2 * sum(mask))
    mse_num = jnp.sum(mdiff * diff)          # == sum(mask * diff * diff)
    mse_den = 2.0 * mask_total

    # ---- GradientLoss over `scales` octaves, computed on the full-resolution
    # arrays.  Sub-sampling by step=2^s commutes with the elementwise
    # mask*(pred-tgt), so the scale-s gradient is the |x[j+step] - x[j]| (and
    # row analogue) of `mdiff`, restricted via an iota selection mask to
    # rows/cols that are multiples of step.  No strided slices, no reshapes.
    grad_terms = []
    if alpha > 0.0:
        for scale in range(scales):
            step = 2 ** scale
            if step == 1:
                msub = mask_total
                mx = mask[:, :, 1:] * mask[:, :, :-1]
                gx = mx * jnp.abs(mdiff[:, :, 1:] - mdiff[:, :, :-1])
                my = mask[:, 1:, :] * mask[:, :-1, :]
                gy = my * jnp.abs(mdiff[:, 1:, :] - mdiff[:, :-1, :])
            else:
                ri = jax.lax.broadcasted_iota(jnp.int32, (B, H, W), 1)
                ci = jax.lax.broadcasted_iota(jnp.int32, (B, H, W), 2)
                sel = (((ri & (step - 1)) == 0)
                       & ((ci & (step - 1)) == 0)).astype(jnp.float32)
                msub = jnp.sum(mask * sel)
                mx = mask[:, :, step:] * mask[:, :, :-step] * sel[:, :, :-step]
                gx = mx * jnp.abs(mdiff[:, :, step:] - mdiff[:, :, :-step])
                my = mask[:, step:, :] * mask[:, :-step, :] * sel[:, :-step, :]
                gy = my * jnp.abs(mdiff[:, step:, :] - mdiff[:, :-step, :])
            # image_loss = mean over (batch, channel=1) of per-image sums,
            # then divided (below) by sum(mask_sub)  -> batch-based reduction.
            grad_terms.append(((jnp.sum(gx) + jnp.sum(gy)) * inv_b, msub))

    # ---- all divides at the end, single scalar SMEM writeback
    total = _safe_div(mse_num, mse_den)
    if alpha > 0.0:
        reg = jnp.float32(0.0)
        for num, den in grad_terms:
            reg = reg + _safe_div(num, den)
        total = total + jnp.float32(alpha) * reg
    out_ref[0, 0] = total


# ----------------------------------------------------------------------------
# Wrapper
# ----------------------------------------------------------------------------
@functools.partial(jax.jit, static_argnames=("alpha", "scales"))
def scale_and_shift_invariant_loss(prediction, target, mask, *, alpha=0.5, scales=4):
    """Forward of ScaleAndShiftInvariantLoss (default config). Inputs: (B, H, W)."""
    prediction = prediction.astype(jnp.float32)
    target = target.astype(jnp.float32)
    mask = mask.astype(jnp.float32)

    # if_scale_aware=False  =>  prediction_ssi = prediction
    kernel = functools.partial(
        _ssi_loss_kernel, alpha=float(alpha), scales=int(scales))

    out = pl.pallas_call(
        kernel,
        out_shape=jax.ShapeDtypeStruct((1, 1), jnp.float32),
        # grid=(): the whole (B,H,W) tensors fit in a single VMEM block; at
        # these tiny shapes the op is 100% launch-overhead bound, so everything
        # is fused into one kernel producing one scalar in SMEM.
        in_specs=[pl.BlockSpec(memory_space=pltpu.MemorySpace.VMEM)] * 3,
        out_specs=pl.BlockSpec(memory_space=pltpu.MemorySpace.SMEM),
    )(prediction, target, mask)
    return out[0, 0]


# ----------------------------------------------------------------------------
# Pure-JAX reference (mirrors the PyTorch math) for a sanity check
# ----------------------------------------------------------------------------
def _reference_loss(pred, tgt, mask, alpha=0.5, scales=4):
    res = pred - tgt
    image_loss = jnp.sum(mask * res * res, axis=(1, 2))
    m = jnp.sum(mask, axis=(1, 2))
    div = jnp.sum(2.0 * m)
    total = jnp.where(div == 0.0, 0.0, jnp.sum(image_loss) / div)

    reg = jnp.float32(0.0)
    for scale in range(scales):
        st = 2 ** scale
        p, t, mk = pred[:, ::st, ::st], tgt[:, ::st, ::st], mask[:, ::st, ::st]
        d = mk * (p - t)
        gx = jnp.abs(d[:, :, 1:] - d[:, :, :-1]) * (mk[:, :, 1:] * mk[:, :, :-1])
        gy = jnp.abs(d[:, 1:, :] - d[:, :-1, :]) * (mk[:, 1:, :] * mk[:, :-1, :])
        # torch: image_loss = mean over (B, C=1) of per-image sums
        il = jnp.mean(jnp.sum(gx, axis=(1, 2)) + jnp.sum(gy, axis=(1, 2)))
        ms = jnp.sum(mk)
        reg = reg + jnp.where(ms == 0.0, 0.0, il / ms)
    return total + alpha * reg


# ----------------------------------------------------------------------------
# Main
# ----------------------------------------------------------------------------
if __name__ == "__main__":
    key = jax.random.PRNGKey(0)
    k1, k2, k3 = jax.random.split(key, 3)

    B, H, W = 2, 16, 16
    prediction = jax.random.normal(k1, (B, H, W), dtype=jnp.float32)
    target = jax.random.normal(k2, (B, H, W), dtype=jnp.float32)
    mask = (jax.random.uniform(k3, (B, H, W)) > 0.3).astype(jnp.float32)

    out = scale_and_shift_invariant_loss(prediction, target, mask)
    out = jax.block_until_ready(out)

    ref = jax.block_until_ready(_reference_loss(prediction, target, mask))
    assert jnp.abs(out - ref) < 1e-3, (out, ref)

    print("KERNEL_OK")
</pallas_src>

<mosaic_0001>
module attributes {stable_mosaic.version = 11 : i64} {
  func.func @_ssi_loss_kernel(%arg0: memref<2x16x16xf32, #tpu.memory_space<vmem>>, %arg1: memref<2x16x16xf32, #tpu.memory_space<vmem>>, %arg2: memref<2x16x16xf32, #tpu.memory_space<vmem>>, %arg3: memref<1x1xf32, #tpu.memory_space<smem>>) attributes {dimension_semantics = [], scalar_prefetch = 0 : i64, scratch_operands = 0 : i64, tpu.core_type = #tpu.core_type<tc>} {
    %c0 = arith.constant 0 : index
    %c0_0 = arith.constant 0 : index
    %c0_1 = arith.constant 0 : index
    %0 = vector.load %arg0[%c0, %c0_0, %c0_1] : memref<2x16x16xf32, #tpu.memory_space<vmem>>, vector<2x16x16xf32>
    %c0_2 = arith.constant 0 : index
    %c0_3 = arith.constant 0 : index
    %c0_4 = arith.constant 0 : index
    %1 = vector.load %arg1[%c0_2, %c0_3, %c0_4] : memref<2x16x16xf32, #tpu.memory_space<vmem>>, vector<2x16x16xf32>
    %c0_5 = arith.constant 0 : index
    %c0_6 = arith.constant 0 : index
    %c0_7 = arith.constant 0 : index
    %2 = vector.load %arg2[%c0_5, %c0_6, %c0_7] : memref<2x16x16xf32, #tpu.memory_space<vmem>>, vector<2x16x16xf32>
    %3 = arith.subf %0, %1 : vector<2x16x16xf32>
    %4 = arith.mulf %2, %3 : vector<2x16x16xf32>
    %5 = vector.shape_cast %2 : vector<2x16x16xf32> to vector<1x2x16x16xf32>
    %cst = arith.constant dense<0.000000e+00> : vector<1xf32>
    %6 = vector.multi_reduction <add>, %5, %cst [1, 2, 3] : vector<1x2x16x16xf32> to vector<1xf32>
    %7 = vector.shape_cast %6 : vector<1xf32> to vector<1x1x1x1xf32>
    %8 = vector.extract %7[0, 0, 0, 0] : f32 from vector<1x1x1x1xf32>
    %9 = arith.mulf %4, %3 : vector<2x16x16xf32>
    %10 = vector.shape_cast %9 : vector<2x16x16xf32> to vector<1x2x16x16xf32>
    %cst_8 = arith.constant dense<0.000000e+00> : vector<1xf32>
    %11 = vector.multi_reduction <add>, %10, %cst_8 [1, 2, 3] : vector<1x2x16x16xf32> to vector<1xf32>
    %12 = vector.shape_cast %11 : vector<1xf32> to vector<1x1x1x1xf32>
    %13 = vector.extract %12[0, 0, 0, 0] : f32 from vector<1x1x1x1xf32>
    %cst_9 = arith.constant 2.000000e+00 : f32
    %14 = arith.mulf %cst_9, %8 : f32
    %15 = vector.extract_strided_slice %2 {offsets = [0, 0, 1], sizes = [2, 16, 15], strides = [1, 1, 1]} : vector<2x16x16xf32> to vector<2x16x15xf32>
    %16 = vector.extract_strided_slice %2 {offsets = [0, 0, 0], sizes = [2, 16, 15], strides = [1, 1, 1]} : vector<2x16x16xf32> to vector<2x16x15xf32>
    %17 = arith.mulf %15, %16 : vector<2x16x15xf32>
    %18 = vector.extract_strided_slice %4 {offsets = [0, 0, 1], sizes = [2, 16, 15], strides = [1, 1, 1]} : vector<2x16x16xf32> to vector<2x16x15xf32>
    %19 = vector.extract_strided_slice %4 {offsets = [0, 0, 0], sizes = [2, 16, 15], strides = [1, 1, 1]} : vector<2x16x16xf32> to vector<2x16x15xf32>
    %20 = arith.subf %18, %19 : vector<2x16x15xf32>
    %21 = math.absf %20 : vector<2x16x15xf32>
    %22 = arith.mulf %17, %21 : vector<2x16x15xf32>
    %23 = vector.extract_strided_slice %2 {offsets = [0, 1, 0], sizes = [2, 15, 16], strides = [1, 1, 1]} : vector<2x16x16xf32> to vector<2x15x16xf32>
    %24 = vector.extract_strided_slice %2 {offsets = [0, 0, 0], sizes = [2, 15, 16], strides = [1, 1, 1]} : vector<2x16x16xf32> to vector<2x15x16xf32>
    %25 = arith.mulf %23, %24 : vector<2x15x16xf32>
    %26 = vector.extract_strided_slice %4 {offsets = [0, 1, 0], sizes = [2, 15, 16], strides = [1, 1, 1]} : vector<2x16x16xf32> to vector<2x15x16xf32>
    %27 = vector.extract_strided_slice %4 {offsets = [0, 0, 0], sizes = [2, 15, 16], strides = [1, 1, 1]} : vector<2x16x16xf32> to vector<2x15x16xf32>
    %28 = arith.subf %26, %27 : vector<2x15x16xf32>
    %29 = math.absf %28 : vector<2x15x16xf32>
    %30 = arith.mulf %25, %29 : vector<2x15x16xf32>
    %31 = vector.shape_cast %22 : vector<2x16x15xf32> to vector<1x2x16x15xf32>
    %cst_10 = arith.constant dense<0.000000e+00> : vector<1xf32>
    %32 = vector.multi_reduction <add>, %31, %cst_10 [1, 2, 3] : vector<1x2x16x15xf32> to vector<1xf32>
    %33 = vector.shape_cast %32 : vector<1xf32> to vector<1x1x1x1xf32>
    %34 = vector.extract %33[0, 0, 0, 0] : f32 from vector<1x1x1x1xf32>
    %35 = vector.shape_cast %30 : vector<2x15x16xf32> to vector<1x2x15x16xf32>
    %cst_11 = arith.constant dense<0.000000e+00> : vector<1xf32>
    %36 = vector.multi_reduction <add>, %35, %cst_11 [1, 2, 3] : vector<1x2x15x16xf32> to vector<1xf32>
    %37 = vector.shape_cast %36 : vector<1xf32> to vector<1x1x1x1xf32>
    %38 = vector.extract %37[0, 0, 0, 0] : f32 from vector<1x1x1x1xf32>
    %39 = arith.addf %34, %38 : f32
    %cst_12 = arith.constant 5.000000e-01 : f32
    %40 = arith.mulf %39, %cst_12 : f32
    %41 = tpu.iota {dimensions = array<i32: 1>} : vector<2x16x16xi32>
    %42 = tpu.iota {dimensions = array<i32: 2>} : vector<2x16x16xi32>
    %c1_i32 = arith.constant 1 : i32
    %43 = vector.broadcast %c1_i32 : i32 to vector<2x16x16xi32>
    %44 = arith.andi %41, %43 : vector<2x16x16xi32>
    %c0_i32 = arith.constant 0 : i32
    %45 = vector.broadcast %c0_i32 : i32 to vector<2x16x16xi32>
    %46 = arith.cmpi eq, %44, %45 : vector<2x16x16xi32>
    %c1_i32_13 = arith.constant 1 : i32
    %47 = vector.broadcast %c1_i32_13 : i32 to vector<2x16x16xi32>
    %48 = arith.andi %42, %47 : vector<2x16x16xi32>
    %c0_i32_14 = arith.constant 0 : i32
    %49 = vector.broadcast %c0_i32_14 : i32 to vector<2x16x16xi32>
    %50 = arith.cmpi eq, %48, %49 : vector<2x16x16xi32>
    %51 = arith.andi %46, %50 : vector<2x16x16xi1>
    %52 = arith.extui %51 : vector<2x16x16xi1> to vector<2x16x16xi32>
    %53 = arith.sitofp %52 : vector<2x16x16xi32> to vector<2x16x16xf32>
    %54 = arith.mulf %2, %53 : vector<2x16x16xf32>
    %55 = vector.shape_cast %54 : vector<2x16x16xf32> to vector<1x2x16x16xf32>
    %cst_15 = arith.constant dense<0.000000e+00> : vector<1xf32>
    %56 = vector.multi_reduction <add>, %55, %cst_15 [1, 2, 3] : vector<1x2x16x16xf32> to vector<1xf32>
    %57 = vector.shape_cast %56 : vector<1xf32> to vector<1x1x1x1xf32>
    %58 = vector.extract %57[0, 0, 0, 0] : f32 from vector<1x1x1x1xf32>
    %59 = vector.extract_strided_slice %2 {offsets = [0, 0, 2], sizes = [2, 16, 14], strides = [1, 1, 1]} : vector<2x16x16xf32> to vector<2x16x14xf32>
    %60 = vector.extract_strided_slice %2 {offsets = [0, 0, 0], sizes = [2, 16, 14], strides = [1, 1, 1]} : vector<2x16x16xf32> to vector<2x16x14xf32>
    %61 = arith.mulf %59, %60 : vector<2x16x14xf32>
    %62 = vector.extract_strided_slice %53 {offsets = [0, 0, 0], sizes = [2, 16, 14], strides = [1, 1, 1]} : vector<2x16x16xf32> to vector<2x16x14xf32>
    %63 = arith.mulf %61, %62 : vector<2x16x14xf32>
    %64 = vector.extract_strided_slice %4 {offsets = [0, 0, 2], sizes = [2, 16, 14], strides = [1, 1, 1]} : vector<2x16x16xf32> to vector<2x16x14xf32>
    %65 = vector.extract_strided_slice %4 {offsets = [0, 0, 0], sizes = [2, 16, 14], strides = [1, 1, 1]} : vector<2x16x16xf32> to vector<2x16x14xf32>
    %66 = arith.subf %64, %65 : vector<2x16x14xf32>
    %67 = math.absf %66 : vector<2x16x14xf32>
    %68 = arith.mulf %63, %67 : vector<2x16x14xf32>
    %69 = vector.extract_strided_slice %2 {offsets = [0, 2, 0], sizes = [2, 14, 16], strides = [1, 1, 1]} : vector<2x16x16xf32> to vector<2x14x16xf32>
    %70 = vector.extract_strided_slice %2 {offsets = [0, 0, 0], sizes = [2, 14, 16], strides = [1, 1, 1]} : vector<2x16x16xf32> to vector<2x14x16xf32>
    %71 = arith.mulf %69, %70 : vector<2x14x16xf32>
    %72 = vector.extract_strided_slice %53 {offsets = [0, 0, 0], sizes = [2, 14, 16], strides = [1, 1, 1]} : vector<2x16x16xf32> to vector<2x14x16xf32>
    %73 = arith.mulf %71, %72 : vector<2x14x16xf32>
    %74 = vector.extract_strided_slice %4 {offsets = [0, 2, 0], sizes = [2, 14, 16], strides = [1, 1, 1]} : vector<2x16x16xf32> to vector<2x14x16xf32>
    %75 = vector.extract_strided_slice %4 {offsets = [0, 0, 0], sizes = [2, 14, 16], strides = [1, 1, 1]} : vector<2x16x16xf32> to vector<2x14x16xf32>
    %76 = arith.subf %74, %75 : vector<2x14x16xf32>
    %77 = math.absf %76 : vector<2x14x16xf32>
    %78 = arith.mulf %73, %77 : vector<2x14x16xf32>
    %79 = vector.shape_cast %68 : vector<2x16x14xf32> to vector<1x2x16x14xf32>
    %cst_16 = arith.constant dense<0.000000e+00> : vector<1xf32>
    %80 = vector.multi_reduction <add>, %79, %cst_16 [1, 2, 3] : vector<1x2x16x14xf32> to vector<1xf32>
    %81 = vector.shape_cast %80 : vector<1xf32> to vector<1x1x1x1xf32>
    %82 = vector.extract %81[0, 0, 0, 0] : f32 from vector<1x1x1x1xf32>
    %83 = vector.shape_cast %78 : vector<2x14x16xf32> to vector<1x2x14x16xf32>
    %cst_17 = arith.constant dense<0.000000e+00> : vector<1xf32>
    %84 = vector.multi_reduction <add>, %83, %cst_17 [1, 2, 3] : vector<1x2x14x16xf32> to vector<1xf32>
    %85 = vector.shape_cast %84 : vector<1xf32> to vector<1x1x1x1xf32>
    %86 = vector.extract %85[0, 0, 0, 0] : f32 from vector<1x1x1x1xf32>
    %87 = arith.addf %82, %86 : f32
    %cst_18 = arith.constant 5.000000e-01 : f32
    %88 = arith.mulf %87, %cst_18 : f32
    %89 = tpu.iota {dimensions = array<i32: 1>} : vector<2x16x16xi32>
    %90 = tpu.iota {dimensions = array<i32: 2>} : vector<2x16x16xi32>
    %c3_i32 = arith.constant 3 : i32
    %91 = vector.broadcast %c3_i32 : i32 to vector<2x16x16xi32>
    %92 = arith.andi %89, %91 : vector<2x16x16xi32>
    %c0_i32_19 = arith.constant 0 : i32
    %93 = vector.broadcast %c0_i32_19 : i32 to vector<2x16x16xi32>
    %94 = arith.cmpi eq, %92, %93 : vector<2x16x16xi32>
    %c3_i32_20 = arith.constant 3 : i32
    %95 = vector.broadcast %c3_i32_20 : i32 to vector<2x16x16xi32>
    %96 = arith.andi %90, %95 : vector<2x16x16xi32>
    %c0_i32_21 = arith.constant 0 : i32
    %97 = vector.broadcast %c0_i32_21 : i32 to vector<2x16x16xi32>
    %98 = arith.cmpi eq, %96, %97 : vector<2x16x16xi32>
    %99 = arith.andi %94, %98 : vector<2x16x16xi1>
    %100 = arith.extui %99 : vector<2x16x16xi1> to vector<2x16x16xi32>
    %101 = arith.sitofp %100 : vector<2x16x16xi32> to vector<2x16x16xf32>
    %102 = arith.mulf %2, %101 : vector<2x16x16xf32>
    %103 = vector.shape_cast %102 : vector<2x16x16xf32> to vector<1x2x16x16xf32>
    %cst_22 = arith.constant dense<0.000000e+00> : vector<1xf32>
    %104 = vector.multi_reduction <add>, %103, %cst_22 [1, 2, 3] : vector<1x2x16x16xf32> to vector<1xf32>
    %105 = vector.shape_cast %104 : vector<1xf32> to vector<1x1x1x1xf32>
    %106 = vector.extract %105[0, 0, 0, 0] : f32 from vector<1x1x1x1xf32>
    %107 = vector.extract_strided_slice %2 {offsets = [0, 0, 4], sizes = [2, 16, 12], strides = [1, 1, 1]} : vector<2x16x16xf32> to vector<2x16x12xf32>
    %108 = vector.extract_strided_slice %2 {offsets = [0, 0, 0], sizes = [2, 16, 12], strides = [1, 1, 1]} : vector<2x16x16xf32> to vector<2x16x12xf32>
    %109 = arith.mulf %107, %108 : vector<2x16x12xf32>
    %110 = vector.extract_strided_slice %101 {offsets = [0, 0, 0], sizes = [2, 16, 12], strides = [1, 1, 1]} : vector<2x16x16xf32> to vector<2x16x12xf32>
    %111 = arith.mulf %109, %110 : vector<2x16x12xf32>
    %112 = vector.extract_strided_slice %4 {offsets = [0, 0, 4], sizes = [2, 16, 12], strides = [1, 1, 1]} : vector<2x16x16xf32> to vector<2x16x12xf32>
    %113 = vector.extract_strided_slice %4 {offsets = [0, 0, 0], sizes = [2, 16, 12], strides = [1, 1, 1]} : vector<2x16x16xf32> to vector<2x16x12xf32>
    %114 = arith.subf %112, %113 : vector<2x16x12xf32>
    %115 = math.absf %114 : vector<2x16x12xf32>
    %116 = arith.mulf %111, %115 : vector<2x16x12xf32>
    %117 = vector.extract_strided_slice %2 {offsets = [0, 4, 0], sizes = [2, 12, 16], strides = [1, 1, 1]} : vector<2x16x16xf32> to vector<2x12x16xf32>
    %118 = vector.extract_strided_slice %2 {offsets = [0, 0, 0], sizes = [2, 12, 16], strides = [1, 1, 1]} : vector<2x16x16xf32> to vector<2x12x16xf32>
    %119 = arith.mulf %117, %118 : vector<2x12x16xf32>
    %120 = vector.extract_strided_slice %101 {offsets = [0, 0, 0], sizes = [2, 12, 16], strides = [1, 1, 1]} : vector<2x16x16xf32> to vector<2x12x16xf32>
    %121 = arith.mulf %119, %120 : vector<2x12x16xf32>
    %122 = vector.extract_strided_slice %4 {offsets = [0, 4, 0], sizes = [2, 12, 16], strides = [1, 1, 1]} : vector<2x16x16xf32> to vector<2x12x16xf32>
    %123 = vector.extract_strided_slice %4 {offsets = [0, 0, 0], sizes = [2, 12, 16], strides = [1, 1, 1]} : vector<2x16x16xf32> to vector<2x12x16xf32>
    %124 = arith.subf %122, %123 : vector<2x12x16xf32>
    %125 = math.absf %124 : vector<2x12x16xf32>
    %126 = arith.mulf %121, %125 : vector<2x12x16xf32>
    %127 = vector.shape_cast %116 : vector<2x16x12xf32> to vector<1x2x16x12xf32>
    %cst_23 = arith.constant dense<0.000000e+00> : vector<1xf32>
    %128 = vector.multi_reduction <add>, %127, %cst_23 [1, 2, 3] : vector<1x2x16x12xf32> to vector<1xf32>
    %129 = vector.shape_cast %128 : vector<1xf32> to vector<1x1x1x1xf32>
    %130 = vector.extract %129[0, 0, 0, 0] : f32 from vector<1x1x1x1xf32>
    %131 = vector.shape_cast %126 : vector<2x12x16xf32> to vector<1x2x12x16xf32>
    %cst_24 = arith.constant dense<0.000000e+00> : vector<1xf32>
    %132 = vector.multi_reduction <add>, %131, %cst_24 [1, 2, 3] : vector<1x2x12x16xf32> to vector<1xf32>
    %133 = vector.shape_cast %132 : vector<1xf32> to vector<1x1x1x1xf32>
    %134 = vector.extract %133[0, 0, 0, 0] : f32 from vector<1x1x1x1xf32>
    %135 = arith.addf %130, %134 : f32
    %cst_25 = arith.constant 5.000000e-01 : f32
    %136 = arith.mulf %135, %cst_25 : f32
    %137 = tpu.iota {dimensions = array<i32: 1>} : vector<2x16x16xi32>
    %138 = tpu.iota {dimensions = array<i32: 2>} : vector<2x16x16xi32>
    %c7_i32 = arith.constant 7 : i32
    %139 = vector.broadcast %c7_i32 : i32 to vector<2x16x16xi32>
    %140 = arith.andi %137, %139 : vector<2x16x16xi32>
    %c0_i32_26 = arith.constant 0 : i32
    %141 = vector.broadcast %c0_i32_26 : i32 to vector<2x16x16xi32>
    %142 = arith.cmpi eq, %140, %141 : vector<2x16x16xi32>
    %c7_i32_27 = arith.constant 7 : i32
    %143 = vector.broadcast %c7_i32_27 : i32 to vector<2x16x16xi32>
    %144 = arith.andi %138, %143 : vector<2x16x16xi32>
    %c0_i32_28 = arith.constant 0 : i32
    %145 = vector.broadcast %c0_i32_28 : i32 to vector<2x16x16xi32>
    %146 = arith.cmpi eq, %144, %145 : vector<2x16x16xi32>
    %147 = arith.andi %142, %146 : vector<2x16x16xi1>
    %148 = arith.extui %147 : vector<2x16x16xi1> to vector<2x16x16xi32>
    %149 = arith.sitofp %148 : vector<2x16x16xi32> to vector<2x16x16xf32>
    %150 = arith.mulf %2, %149 : vector<2x16x16xf32>
    %151 = vector.shape_cast %150 : vector<2x16x16xf32> to vector<1x2x16x16xf32>
    %cst_29 = arith.constant dense<0.000000e+00> : vector<1xf32>
    %152 = vector.multi_reduction <add>, %151, %cst_29 [1, 2, 3] : vector<1x2x16x16xf32> to vector<1xf32>
    %153 = vector.shape_cast %152 : vector<1xf32> to vector<1x1x1x1xf32>
    %154 = vector.extract %153[0, 0, 0, 0] : f32 from vector<1x1x1x1xf32>
    %155 = vector.extract_strided_slice %2 {offsets = [0, 0, 8], sizes = [2, 16, 8], strides = [1, 1, 1]} : vector<2x16x16xf32> to vector<2x16x8xf32>
    %156 = vector.extract_strided_slice %2 {offsets = [0, 0, 0], sizes = [2, 16, 8], strides = [1, 1, 1]} : vector<2x16x16xf32> to vector<2x16x8xf32>
    %157 = arith.mulf %155, %156 : vector<2x16x8xf32>
    %158 = vector.extract_strided_slice %149 {offsets = [0, 0, 0], sizes = [2, 16, 8], strides = [1, 1, 1]} : vector<2x16x16xf32> to vector<2x16x8xf32>
    %159 = arith.mulf %157, %158 : vector<2x16x8xf32>
    %160 = vector.extract_strided_slice %4 {offsets = [0, 0, 8], sizes = [2, 16, 8], strides = [1, 1, 1]} : vector<2x16x16xf32> to vector<2x16x8xf32>
    %161 = vector.extract_strided_slice %4 {offsets = [0, 0, 0], sizes = [2, 16, 8], strides = [1, 1, 1]} : vector<2x16x16xf32> to vector<2x16x8xf32>
    %162 = arith.subf %160, %161 : vector<2x16x8xf32>
    %163 = math.absf %162 : vector<2x16x8xf32>
    %164 = arith.mulf %159, %163 : vector<2x16x8xf32>
    %165 = vector.extract_strided_slice %2 {offsets = [0, 8, 0], sizes = [2, 8, 16], strides = [1, 1, 1]} : vector<2x16x16xf32> to vector<2x8x16xf32>
    %166 = vector.extract_strided_slice %2 {offsets = [0, 0, 0], sizes = [2, 8, 16], strides = [1, 1, 1]} : vector<2x16x16xf32> to vector<2x8x16xf32>
    %167 = arith.mulf %165, %166 : vector<2x8x16xf32>
    %168 = vector.extract_strided_slice %149 {offsets = [0, 0, 0], sizes = [2, 8, 16], strides = [1, 1, 1]} : vector<2x16x16xf32> to vector<2x8x16xf32>
    %169 = arith.mulf %167, %168 : vector<2x8x16xf32>
    %170 = vector.extract_strided_slice %4 {offsets = [0, 8, 0], sizes = [2, 8, 16], strides = [1, 1, 1]} : vector<2x16x16xf32> to vector<2x8x16xf32>
    %171 = vector.extract_strided_slice %4 {offsets = [0, 0, 0], sizes = [2, 8, 16], strides = [1, 1, 1]} : vector<2x16x16xf32> to vector<2x8x16xf32>
    %172 = arith.subf %170, %171 : vector<2x8x16xf32>
    %173 = math.absf %172 : vector<2x8x16xf32>
    %174 = arith.mulf %169, %173 : vector<2x8x16xf32>
    %175 = vector.shape_cast %164 : vector<2x16x8xf32> to vector<1x2x16x8xf32>
    %cst_30 = arith.constant dense<0.000000e+00> : vector<1xf32>
    %176 = vector.multi_reduction <add>, %175, %cst_30 [1, 2, 3] : vector<1x2x16x8xf32> to vector<1xf32>
    %177 = vector.shape_cast %176 : vector<1xf32> to vector<1x1x1x1xf32>
    %178 = vector.extract %177[0, 0, 0, 0] : f32 from vector<1x1x1x1xf32>
    %179 = vector.shape_cast %174 : vector<2x8x16xf32> to vector<1x2x8x16xf32>
    %cst_31 = arith.constant dense<0.000000e+00> : vector<1xf32>
    %180 = vector.multi_reduction <add>, %179, %cst_31 [1, 2, 3] : vector<1x2x8x16xf32> to vector<1xf32>
    %181 = vector.shape_cast %180 : vector<1xf32> to vector<1x1x1x1xf32>
    %182 = vector.extract %181[0, 0, 0, 0] : f32 from vector<1x1x1x1xf32>
    %183 = arith.addf %178, %182 : f32
    %cst_32 = arith.constant 5.000000e-01 : f32
    %184 = arith.mulf %183, %cst_32 : f32
    %cst_33 = arith.constant 0.000000e+00 : f32
    %185 = arith.cmpf oeq, %14, %cst_33 : f32
    %cst_34 = arith.constant 0.000000e+00 : f32
    %186 = arith.cmpf oeq, %14, %cst_34 : f32
    %cst_35 = arith.constant 1.000000e+00 : f32
    %187 = arith.select %186, %cst_35, %14 : f32
    %188 = arith.divf %13, %187 : f32
    %cst_36 = arith.constant 0.000000e+00 : f32
    %189 = arith.select %185, %cst_36, %188 : f32
    %cst_37 = arith.constant 0.000000e+00 : f32
    %190 = arith.cmpf oeq, %8, %cst_37 : f32
    %cst_38 = arith.constant 0.000000e+00 : f32
    %191 = arith.cmpf oeq, %8, %cst_38 : f32
    %cst_39 = arith.constant 1.000000e+00 : f32
    %192 = arith.select %191, %cst_39, %8 : f32
    %193 = arith.divf %40, %192 : f32
    %cst_40 = arith.constant 0.000000e+00 : f32
    %194 = arith.select %190, %cst_40, %193 : f32
    %cst_41 = arith.constant 0.000000e+00 : f32
    %195 = arith.addf %cst_41, %194 : f32
    %cst_42 = arith.constant 0.000000e+00 : f32
    %196 = arith.cmpf oeq, %58, %cst_42 : f32
    %cst_43 = arith.constant 0.000000e+00 : f32
    %197 = arith.cmpf oeq, %58, %cst_43 : f32
    %cst_44 = arith.constant 1.000000e+00 : f32
    %198 = arith.select %197, %cst_44, %58 : f32
    %199 = arith.divf %88, %198 : f32
    %cst_45 = arith.constant 0.000000e+00 : f32
    %200 = arith.select %196, %cst_45, %199 : f32
    %201 = arith.addf %195, %200 : f32
    %cst_46 = arith.constant 0.000000e+00 : f32
    %202 = arith.cmpf oeq, %106, %cst_46 : f32
    %cst_47 = arith.constant 0.000000e+00 : f32
    %203 = arith.cmpf oeq, %106, %cst_47 : f32
    %cst_48 = arith.constant 1.000000e+00 : f32
    %204 = arith.select %203, %cst_48, %106 : f32
    %205 = arith.divf %136, %204 : f32
    %cst_49 = arith.constant 0.000000e+00 : f32
    %206 = arith.select %202, %cst_49, %205 : f32
    %207 = arith.addf %201, %206 : f32
    %cst_50 = arith.constant 0.000000e+00 : f32
    %208 = arith.cmpf oeq, %154, %cst_50 : f32
    %cst_51 = arith.constant 0.000000e+00 : f32
    %209 = arith.cmpf oeq, %154, %cst_51 : f32
    %cst_52 = arith.constant 1.000000e+00 : f32
    %210 = arith.select %209, %cst_52, %154 : f32
    %211 = arith.divf %184, %210 : f32
    %cst_53 = arith.constant 0.000000e+00 : f32
    %212 = arith.select %208, %cst_53, %211 : f32
    %213 = arith.addf %207, %212 : f32
    %cst_54 = arith.constant 5.000000e-01 : f32
    %214 = arith.mulf %cst_54, %213 : f32
    %215 = arith.addf %189, %214 : f32
    %c0_55 = arith.constant 0 : index
    %c0_56 = arith.constant 0 : index
    %216 = memref.load %arg3[%c0_55, %c0_56] : memref<1x1xf32, #tpu.memory_space<smem>>
    memref.store %215, %arg3[%c0_55, %c0_56] : memref<1x1xf32, #tpu.memory_space<smem>>
    return
  }
}

</mosaic_0001>

<bundles_post_ra>
// kernel: scale_and_shift_invariant_loss.1
= control target key start
LH: loop header
LB: loop body
LE: loop exit
PB: predicated region body
PF: predicated region fallthrough
CT: control target
= control target key end

     0   :  { %8 = vsyncpa [#allocation3], 0  ;;  %s1676_s0 = inlined_call_operand.hbm [shape: f32[2,16,16], index: 0, kind: input, shape index: {}]   ;;  %s1677_s1 = inlined_call_operand.hbm [shape: f32[2,16,16], index: 1, kind: input, shape index: {}]   ;;  %s1678_s2 = inlined_call_operand.hbm [shape: f32[2,16,16], index: 2, kind: input, shape index: {}]   ;;  %s1679_s3 = inlined_call_operand.hbm [shape: f32[1,1], index: 3, kind: output, shape index: {}]  }
   0x1   :  { %9 = vsyncpa [#allocation6], 0 }
   0x2   :  { %10 = vsyncpa [#allocation4], 0  ;;  %s28_s14 = sshll.u32 %s1677_s1, 4  ;;  %s1111_s15 = smov [#allocation5]   ;;  %s29_s14 = int_to_ptr.hbm [resolvable:$true] %s28_s14 }
   0x3   :  { %s30_s16 = sshll.u32 %s1111_s15, 4  ;;  %s15_s19 = sshll.u32 %s1676_s0, 4  ;;  %s31_s16 = int_to_ptr.vmem [resolvable:$true] %s30_s16  ;;  %s16_s19 = int_to_ptr.hbm [resolvable:$true] %s15_s19 }
   0x4   :  { %s1112_s20 = smov 128   ;;  %s1113_s21 = smov 8  }
   0x5   :  { %36 = dma.hbm_to_vmem [thread:$0]  %s29_s14, 512, %s31_s16, [#allocation6], %s1112_s20, %s1112_s20, %s1113_s21  }
   0x6   :  { %s1114_s22 = smov [#allocation2]   ;;  %s41_s26 = sshll.u32 %s1678_s2, 4  ;;  %s42_s26 = int_to_ptr.hbm [resolvable:$true] %s41_s26 }
   0x7   :  { %s17_s23 = sshll.u32 %s1114_s22, 4  ;;  %s1115_s1 = smov [#allocation7]   ;;  %s18_s23 = int_to_ptr.vmem [resolvable:$true] %s17_s23 }
   0x8   :  { %23 = dma.hbm_to_vmem [thread:$0]  %s16_s19, 512, %s18_s23, [#allocation3], %s1112_s20, %s1112_s20, %s1113_s21  }
   0x9   :  { %s43_s27 = sshll.u32 %s1115_s1, 4  ;;  %s44_s27 = int_to_ptr.vmem [resolvable:$true] %s43_s27 }
   0xa   :  { %49 = dma.hbm_to_vmem [thread:$0]  %s42_s26, 512, %s44_s27, [#allocation6], %s1112_s20, %s1112_s20, %s1113_s21  }
   0xb   :  { %1105 = dma.done.wait [#allocation3], 512  }
   0xc   :  { %1106 = vsyncadd [#allocation3], 4294966784 }
   0xd   :  { %1107 = dma.done.wait [#allocation6], 1024  }
   0xe   :  { %1108 = vsyncadd [#allocation6], 4294966272  ;;  %v1157_v0 = vld [vmem:[#allocation7] sm:$0xff]  ;;  %s1116_s0 = smov 1   ;;  %s1117_s2 = smov 2   ;;  %v63_v4 = vld [vmem:[#allocation2 + $0x8] sm:$0xff]  ;;  %v272_v14 = vlaneseq }
   0xf   :  { %v62_v1 = vld [vmem:[#allocation2] sm:$0xff]  ;;  %124 = vrot.lane.b32.xlu1 %v1157_v0, %s1116_s0  ;;  %309 = vrot.lane.b32.xlu2 %v1157_v0, %s1117_s2  ;;  %v67_v5 = vld [vmem:[#allocation5 + $0x8] sm:$0xff]  ;;  %v64_v7 = vld [vmem:[#allocation2 + $0x10] sm:$0xff]  ;;  %v1118_v27 = vmov 0.0   ;;  %s1119_s28 = smov 4   ;;  %s1120_s29 = smov 127  }
  0x10   :  { %v66_v2 = vld [vmem:[#allocation5] sm:$0xff]  ;;  %v68_v8 = vld [vmem:[#allocation5 + $0x10] sm:$0xff]  ;;  %v1173_v10 = vsub.f32 %v63_v4, %v67_v5  ;;  %v1177_v12 = vld [vmem:[#allocation7 + $0x8] sm:$0xff]  ;;  %v273_v16 = vshrl.u32 %v272_v14, 7  ;;  %v276_v19 = vand.u32 127, %v272_v14  ;;  %s1121_s30 = smov 126  }
  0x11   :  { %v1161_v3 = vsub.f32 %v62_v1, %v66_v2  ;;  %v1169_v9 = vsub.f32 %v64_v7, %v68_v8  ;;  %v1175_v11 = vld [vmem:[#allocation7 + $0x10] sm:$0xff]  ;;  %v65_v17 = vld [vmem:[#allocation2 + $0x18] sm:$0xff]  ;;  %s1122_s4 = smov 124   ;;  %vm361_vm15 = vcmask 1041408   ;;  %s1123_s5 = smov 120  }
  0x12   :  { %v1187_v15 = vmul.f32 %v1173_v10, %v1177_v12  ;;  %v69_v18 = vld [vmem:[#allocation5 + $0x18] sm:$0xff]  ;;  %v274_v20 = vadd.s32 8, %v273_v16  ;;  %v277_v23 = vand.u32 1, %v273_v16  ;;  %v281_v24 = vand.u32 1, %v276_v19 }
  0x13   :  { %v1167_v6 = vmul.f32 %v1161_v3, %v1157_v0  ;;  %v1181_v13 = vmul.f32 %v1169_v9, %v1175_v11  ;;  %v1195_v21 = vsub.f32 %v65_v17, %v69_v18  ;;  %v1199_v22 = vld [vmem:[#allocation7 + $0x18] sm:$0xff]  ;;  %v474_v31 = vand.u32 3, %v273_v16 }
  0x14   :  { %v278_v25 = vand.u32 1, %v274_v20  ;;  %vm279_vm0 = vcmp.eq.s32.totalorder %v277_v23, 0  ;;  %vm282_vm1 = vcmp.eq.s32.totalorder %v281_v24, 0  ;;  %v478_v32 = vand.u32 3, %v276_v19 }
  0x15   :  { %144 = vrot.lane.b32.xlu0 %v1167_v6, %s1116_s0  ;;  %v1205_v26 = vmul.f32 %v1195_v21, %v1199_v22  ;;  %vm283_vm3 = vmand %vm279_vm0, %vm282_vm1  ;;  %v475_v33 = vand.u32 3, %v274_v20  ;;  %vm476_vm5 = vcmp.eq.s32.totalorder %v474_v31, 0  ;;  %v670_v37 = vand.u32 7, %v273_v16 }
  0x16   :  { %vm280_vm2 = vcmp.eq.s32.totalorder %v278_v25, 0  ;;  %v1213_v28 = vsel %vm283_vm3, 1.0, %v1118_v27  ;;  %vm479_vm6 = vcmp.eq.s32.totalorder %v478_v32, 0  ;;  %v671_v38 = vand.u32 7, %v274_v20 }
  0x17   :  { %126 = vrot.lane.b32.xlu1 %v1177_v12, %s1116_s0  ;;  %148 = vrot.lane.b32.xlu2 %v1181_v13, %s1116_s0  ;;  %vm284_vm4 = vmand %vm280_vm2, %vm282_vm1  ;;  %vm477_vm7 = vcmp.eq.s32.totalorder %v475_v33, 0  ;;  %v674_v39 = vand.u32 7, %v276_v19  ;;  %vm672_vm10 = vcmp.eq.s32.totalorder %v670_v37, 0  ;;  %vm168_vm0 = vcmask 1040384  }
  0x18   :  { %v1215_v29 = vsel %vm284_vm4, 1.0, %v1118_v27  ;;  %vm480_vm8 = vmand %vm476_vm5, %vm479_vm6  ;;  %vm673_vm11 = vcmp.eq.s32.totalorder %v671_v38, 0  ;;  %vm82_vm1 = vcmask 130048   ;;  %vm444_vm2 = vcmask 1045504  }
  0x19   :  { %v992_v30 = vpack.i.bf16 %v1215_v29, %v1213_v28  ;;  %vm481_vm9 = vmand %vm477_vm7, %vm479_vm6  ;;  %v1230_v34 = vsel %vm480_vm8, 1.0, %v1118_v27  ;;  %vm675_vm12 = vcmp.eq.s32.totalorder %v674_v39, 0  ;;  %vm242_vm3 = vcmask 1046528  }
  0x1a   :  { %v1232_v35 = vsel %vm481_vm9, 1.0, %v1118_v27  ;;  %vm676_vm13 = vmand %vm672_vm10, %vm675_vm12  ;;  %vm456_vm4 = vcmask 128000   ;;  %vm254_vm5 = vcmask 129024   ;;  %vm558_vm6 = vcmask 1043456  }
  0x1b   :  { %v997_v36 = vpack.i.bf16 %v1232_v35, %v1230_v34  ;;  %vm677_vm14 = vmand %vm673_vm11, %vm675_vm12  ;;  %v1254_v40 = vsel %vm676_vm13, 1.0, %v1118_v27  ;;  %vm652_vm7 = vcmask 125952   ;;  %vm423_vm8 = vcmask 113664  }
  0x1c   :  { %v1258_v41 = vsel %vm677_vm14, 1.0, %v1118_v27  ;;  %vm221_vm9 = vcmask 121856   ;;  %vm620_vm10 = vcmask 97280   ;;  %vm780_vm11 = vcmask 64512  }
  0x1d   :  { %146 = vrot.lane.b32.xlu0 %v1187_v15, %s1116_s0  ;;  %v1002_v42 = vpack.i.bf16 %v1258_v41, %v1254_v40 }
  0x1f   :  { %337 = vrot.lane.b32.xlu1 %v1167_v6, %s1117_s2  ;;  %339 = vrot.lane.b32.xlu2 %v1187_v15, %s1117_s2 }
  0x25   :  { %311 = vrot.lane.b32.xlu0 %v1177_v12, %s1117_s2 }
  0x27   :  { %150 = vrot.lane.b32.xlu1 %v1205_v26, %s1116_s0  ;;  %313 = vrot.lane.b32.xlu2 %v1175_v11, %s1117_s2 }
  0x2d   :  { %128 = vrot.lane.b32.xlu0 %v1175_v11, %s1116_s0 }
  0x2f   :  { %341 = vrot.lane.b32.xlu1 %v1181_v13, %s1117_s2  ;;  %506 = vrot.lane.b32.xlu2 %v1157_v0, %s1119_s28 }
  0x35   :  { %993 = vrot.lane.b32.xlu0 %v992_v30, %s1117_s2 }
  0x37   :  { %534 = vrot.lane.b32.xlu1 %v1167_v6, %s1119_s28  ;;  %536 = vrot.lane.b32.xlu2 %v1187_v15, %s1119_s28 }
  0x3d   :  { %508 = vrot.lane.b32.xlu0 %v1177_v12, %s1119_s28 }
  0x3f   :  { %315 = vrot.lane.b32.xlu1 %v1199_v22, %s1117_s2  ;;  %343 = vrot.lane.b32.xlu2 %v1205_v26, %s1117_s2 }
  0x45   :  { %130 = vrot.lane.b32.xlu0 %v1199_v22, %s1116_s0 }
  0x47   :  { %998 = vrot.lane.b32.xlu1 %v997_v36, %s1119_s28  ;;  %538 = vrot.lane.b32.xlu2 %v1181_v13, %s1119_s28 }
  0x4d   :  { %510 = vrot.lane.b32.xlu0 %v1175_v11, %s1119_s28 }
  0x4f   :  { %540 = vrot.lane.b32.xlu1 %v1205_v26, %s1119_s28  ;;  %702 = vrot.lane.b32.xlu2 %v1157_v0, %s1113_s21 }
  0x55   :  { %512 = vrot.lane.b32.xlu0 %v1199_v22, %s1119_s28 }
  0x57   :  { %732 = vrot.lane.b32.xlu2 %v1187_v15, %s1113_s21  ;;  %730 = vrot.lane.b32.xlu1 %v1167_v6, %s1113_s21 }
  0x5d   :  { %704 = vrot.lane.b32.xlu0 %v1177_v12, %s1113_s21 }
  0x5f   :  { %734 = vrot.lane.b32.xlu2 %v1181_v13, %s1113_s21  ;;  %1003 = vrot.lane.b32.xlu1 %v1002_v42, %s1113_s21 }
  0x65   :  { %706 = vrot.lane.b32.xlu0 %v1175_v11, %s1113_s21 }
  0x67   :  { %736 = vrot.lane.b32.xlu1 %v1205_v26, %s1113_s21 }
  0x69   :  { %v310_v43 = vpop.permute.xlu2 %309 }
  0x6a   :  { %v321_v18 = vmul.f32 %v310_v43, %v1157_v0 }
  0x6d   :  { %708 = vrot.lane.b32.xlu0 %v1199_v22, %s1113_s21 }
  0x71   :  { %v149_v44 = vpop.permute.xlu2 %148 }
  0x72   :  { %v158_v61 = vsub.f32 %v1181_v13, %v149_v44 }
  0x74   :  { %v162_v1 = vand.u32 2147483647, %v158_v61 }
  0x79   :  { %v340_v48 = vpop.permute.xlu2 %339 }
  0x7a   :  { %v350_v8 = vsub.f32 %v1187_v15, %v340_v48 }
  0x7c   :  { %v354_v24 = vand.u32 2147483647, %v350_v8 }
  0x81   :  { %v125_v45 = vpop.permute.xlu1 %124  ;;  %v314_v58 = vpop.permute.xlu2 %313 }
  0x82   :  { %v136_v49 = vmul.f32 %v125_v45, %v1157_v0  ;;  %v323_v32 = vmul.f32 %v314_v58, %v1175_v11 }
  0x87   :  { %v145_v46 = vpop.permute.xlu0 %144 }
  0x88   :  { %v156_v47 = vsub.f32 %v1167_v6, %v145_v46 }
  0x89   :  { %v127_v51 = vpop.permute.xlu1 %126  ;;  %v507_v63 = vpop.permute.xlu2 %506 }
  0x8a   :  { %v160_v50 = vand.u32 2147483647, %v156_v47  ;;  %v137_v55 = vmul.f32 %v127_v51, %v1177_v12 }
  0x8c   :  { %v164_v52 = vmul.f32 %v160_v50, %v136_v49 }
  0x8e   :  { %209 = vrot.lane.b32.xlu2 %v164_v52, %s1120_s29 }
  0x8f   :  { %v147_v53 = vpop.permute.xlu0 %146 }
  0x90   :  { %v157_v54 = vsub.f32 %v1187_v15, %v147_v53 }
  0x91   :  { %v338_v57 = vpop.permute.xlu1 %337  ;;  %v537_v17 = vpop.permute.xlu2 %536 }
  0x92   :  { %v161_v56 = vand.u32 2147483647, %v157_v54  ;;  %v349_v14 = vsub.f32 %v1167_v6, %v338_v57  ;;  %v547_v54 = vsub.f32 %v1187_v15, %v537_v17  ;;  %v518_v57 = vmul.f32 %v507_v63, %v1157_v0 }
  0x93   :  { %v362_v17 = vrot.slane %v1157_v0, 6 }
  0x94   :  { %v165_v59 = vmul.f32 %v161_v56, %v137_v55  ;;  %v353_v25 = vand.u32 2147483647, %v349_v14 }
  0x96   :  { %211 = vrot.lane.b32.xlu0 %v165_v59, %s1120_s29 }
  0x97   :  { %v312_v60 = vpop.permute.xlu0 %311 }
  0x98   :  { %v322_v19 = vmul.f32 %v312_v60, %v1177_v12 }
  0x99   :  { %v151_v62 = vpop.permute.xlu1 %150  ;;  %v344_v42 = vpop.permute.xlu2 %343 }
  0x9a   :  { %v159_v45 = vsub.f32 %v1205_v26, %v151_v62  ;;  %v352_v46 = vsub.f32 %v1205_v26, %v344_v42 }
  0x9c   :  { %v163_v50 = vand.u32 2147483647, %v159_v45  ;;  %v356_v51 = vand.u32 2147483647, %v352_v46 }
  0x9f   :  { %v129_v2 = vpop.permute.xlu0 %128 }
  0xa0   :  { %v138_v4 = vmul.f32 %v129_v2, %v1175_v11  ;;  %v551_v2 = vand.u32 2147483647, %v547_v54 }
  0xa1   :  { %v342_v7 = vpop.permute.xlu1 %341 }
  0xa2   :  { %v166_v5 = vmul.f32 %v162_v1, %v138_v4  ;;  %v351_v37 = vsub.f32 %v1181_v13, %v342_v7  ;;  %v539_v1 = vpop.permute.xlu2 %538 }
  0xa3   :  { %v548_v8 = vsub.f32 %v1181_v13, %v539_v1 }
  0xa4   :  { %213 = vrot.lane.b32.xlu1 %v166_v5, %s1120_s29  ;;  %v355_v43 = vand.u32 2147483647, %v351_v37 }
  0xa7   :  { %v994_v16 = vpop.permute.xlu0 %993 }
  0xa8   :  { %v996_v20 = vunpack.i.h.bf16 %v994_v16  ;;  %v995_v23 = vunpack.i.l.bf16 %v994_v16 }
  0xa9   :  { %v535_v31 = vpop.permute.xlu1 %534 }
  0xaa   :  { %v334_v27 = vmul.f32 %v996_v20, %v322_v19  ;;  %v333_v30 = vmul.f32 %v995_v23, %v321_v18  ;;  %v335_v39 = vmul.f32 %v995_v23, %v323_v32  ;;  %v546_v55 = vsub.f32 %v1167_v6, %v535_v31 }
  0xab   :  { %v363_v18 = vrot.slane %v1177_v12, 6  ;;  %v386_v23 = vrot.slane %v1187_v15, 6  ;;  %v376_v31 = vrot.slane %v1213_v28, 6  ;;  %v377_v32 = vrot.slane %v1215_v29, 6 }
  0xac   :  { %v358_v33 = vmul.f32 %v354_v24, %v334_v27  ;;  %v357_v36 = vmul.f32 %v353_v25, %v333_v30  ;;  %v359_v48 = vmul.f32 %v355_v43, %v335_v39  ;;  %v550_v4 = vand.u32 2147483647, %v546_v55 }
  0xad   :  { %v552_v24 = vand.u32 2147483647, %v548_v8  ;;  %v365_v27 = vrot.slane %v1175_v11, 6  ;;  %v366_v30 = vrot.slane %v1199_v22, 6  ;;  %v389_v39 = vrot.slane %v1205_v26, 6 }
  0xae   :  { %413 = vrot.lane.b32.xlu0 %v358_v33, %s1121_s30  ;;  %411 = vrot.lane.b32.xlu2 %v357_v36, %s1121_s30  ;;  %v364_v33 = vsel %vm361_vm15, %v362_v17, %v363_v18  ;;  %v378_v46 = vsel %vm361_vm15, %v376_v31, %v377_v32 }
  0xaf   :  { %v509_v38 = vpop.permute.xlu0 %508  ;;  %v367_v43 = vsel %vm361_vm15, %v365_v27, %v366_v30  ;;  %v373_v45 = vmul.f32 %v364_v33, %v1177_v12 }
  0xb0   :  { %v519_v59 = vmul.f32 %v509_v38, %v1177_v12  ;;  %v388_v38 = vrot.slane %v1181_v13, 6 }
  0xb1   :  { %v316_v44 = vpop.permute.xlu1 %315  ;;  %v382_v55 = vmul.f32 %v378_v46, %v373_v45 }
  0xb2   :  { %v324_v47 = vmul.f32 %v316_v44, %v1199_v22  ;;  %v372_v44 = vmul.f32 %v362_v17, %v1157_v0  ;;  %v397_v1 = vsub.f32 %v1181_v13, %v388_v38 }
  0xb4   :  { %v336_v52 = vmul.f32 %v996_v20, %v324_v47  ;;  %v385_v20 = vrot.slane %v1167_v6, 6  ;;  %v169_v47 = vrot.slane %v1157_v0, 7  ;;  %v381_v54 = vmul.f32 %v376_v31, %v372_v44 }
  0xb6   :  { %415 = vrot.lane.b32.xlu2 %v359_v48, %s1121_s30  ;;  %v360_v62 = vmul.f32 %v356_v51, %v336_v52  ;;  %v387_v37 = vsel %vm361_vm15, %v385_v20, %v386_v23  ;;  %v170_v48 = vrot.slane %v1177_v12, 7  ;;  %v390_v51 = vsel %vm361_vm15, %v388_v38, %v389_v39 }
  0xb7   :  { %v131_v49 = vpop.permute.xlu0 %130  ;;  %v395_v52 = vsub.f32 %v1167_v6, %v385_v20  ;;  %v179_v18 = vmul.f32 %v169_v47, %v1157_v0  ;;  %v401_v38 = vand.u32 2147483647, %v397_v1 }
  0xb8   :  { %v139_v53 = vmul.f32 %v131_v49, %v1199_v22  ;;  %v374_v49 = vmul.f32 %v365_v27, %v1175_v11 }
  0xb9   :  { %v1290_v58 = vpop.permute.xlu1 %998 }
  0xba   :  { %v167_v56 = vmul.f32 %v163_v50, %v139_v53  ;;  %v1001_v60 = vunpack.i.h.bf16 %v1290_v58  ;;  %v1000_v61 = vunpack.i.l.bf16 %v1290_v58  ;;  %v375_v50 = vmul.f32 %v367_v43, %v1199_v22 }
  0xbb   :  { %v396_v53 = vsub.f32 %v1187_v15, %v387_v37  ;;  %v383_v33 = vmul.f32 %v376_v31, %v374_v49  ;;  %v574_v58 = vrot.slane %v1232_v35, 4 }
  0xbc   :  { %215 = vrot.lane.b32.xlu1 %v167_v56, %s1120_s29  ;;  %v530_v5 = vmul.f32 %v1000_v61, %v518_v57  ;;  %v531_v7 = vmul.f32 %v1001_v60, %v519_v59  ;;  %v172_v56 = vrot.slane %v1175_v11, 7  ;;  %v171_v57 = vsel %vm168_vm0, %v169_v47, %v170_v48 }
  0xbd   :  { %v173_v59 = vrot.slane %v1199_v22, 7  ;;  %v384_v37 = vmul.f32 %v378_v46, %v375_v50  ;;  %v405_v31 = vmul.f32 %v401_v38, %v383_v33 }
  0xbe   :  { %417 = vrot.lane.b32.xlu2 %v360_v62, %s1121_s30  ;;  %v554_v16 = vmul.f32 %v550_v4, %v530_v5  ;;  %v555_v19 = vmul.f32 %v551_v2, %v531_v7  ;;  %v184_v62 = vrot.slane %v1187_v15, 7  ;;  %v398_v2 = vsub.f32 %v1205_v26, %v390_v51 }
  0xbf   :  { %v511_v63 = vpop.permute.xlu0 %510  ;;  %v186_v4 = vrot.slane %v1181_v13, 7  ;;  %v187_v5 = vrot.slane %v1205_v26, 7  ;;  %v399_v7 = vand.u32 2147483647, %v395_v52  ;;  %v181_v44 = vmul.f32 %v172_v56, %v1175_v11 }
  0xc0   :  { %v520_v14 = vmul.f32 %v511_v63, %v1175_v11  ;;  %608 = vrot.lane.b32.xlu0 %v554_v16, %s1122_s4  ;;  %v400_v63 = vand.u32 2147483647, %v396_v53  ;;  %v402_v39 = vand.u32 2147483647, %v398_v2  ;;  %v83_v53 = vsel %vm82_vm1, %v1157_v0, 0.0 }
  0xc1   :  { %v1340_v17 = vpop.permute.xlu1 %540  ;;  %v188_v20 = vsel %vm168_vm0, %v186_v4, %v187_v5  ;;  %v86_v2 = vsel %vm82_vm1, %v1175_v11, 0.0 }
  0xc2   :  { %v532_v25 = vmul.f32 %v1000_v61, %v520_v14  ;;  %v183_v61 = vrot.slane %v1167_v6, 7  ;;  %v196_v27 = vsub.f32 %v1205_v26, %v188_v20  ;;  %v404_v43 = vmul.f32 %v400_v63, %v382_v55 }
  0xc3   :  { %v406_v46 = vmul.f32 %v402_v39, %v384_v37 }
  0xc4   :  { %610 = vrot.lane.b32.xlu1 %v555_v19, %s1122_s4  ;;  %v556_v42 = vmul.f32 %v552_v24, %v532_v25  ;;  %v185_v8 = vsel %vm168_vm0, %v183_v61, %v184_v62  ;;  %v193_v14 = vsub.f32 %v1167_v6, %v183_v61  ;;  %v180_v19 = vmul.f32 %v171_v57, %v1177_v12 }
  0xc5   :  { %v194_v23 = vsub.f32 %v1187_v15, %v185_v8  ;;  %v174_v24 = vsel %vm168_vm0, %v172_v56, %v173_v59  ;;  %v195_v25 = vsub.f32 %v1181_v13, %v186_v4  ;;  %v200_v48 = vand.u32 2147483647, %v196_v27 }
  0xc6   :  { %v197_v30 = vand.u32 2147483647, %v193_v14  ;;  %v182_v45 = vmul.f32 %v174_v24, %v1199_v22  ;;  %v84_v57 = vsel %vm82_vm1, %v1177_v12, 0.0  ;;  %v448_v4 = vrot.slane %v405_v31, 2 }
  0xc7   :  { %v1312_v36 = vpop.permute.xlu0 %512  ;;  %v198_v32 = vand.u32 2147483647, %v194_v23  ;;  %v199_v47 = vand.u32 2147483647, %v195_v25  ;;  %v85_v1 = vadd.f32 %v84_v57, %v83_v53  ;;  %v449_v5 = vrot.slane %v406_v46, 2 }
  0xc8   :  { %612 = vrot.lane.b32.xlu0 %v556_v42, %s1122_s4  ;;  %v403_v42 = vmul.f32 %v399_v7, %v381_v54  ;;  %v201_v51 = vmul.f32 %v197_v30, %v179_v18  ;;  %v446_v54 = vrot.slane %v404_v43, 2  ;;  %v204_v59 = vmul.f32 %v200_v48, %v182_v45 }
  0xc9   :  { %v202_v52 = vmul.f32 %v198_v32, %v180_v19  ;;  %v1357_v55 = vpop.permute.xlu1 %730  ;;  %v203_v56 = vmul.f32 %v199_v47, %v181_v44  ;;  %v87_v18 = vadd.f32 %v86_v2, %v85_v1  ;;  %v88_v19 = vsel %vm82_vm1, %v1199_v22, 0.0 }
  0xca   :  { %v445_v50 = vrot.slane %v403_v42, 2  ;;  %v243_v61 = vrot.slane %v201_v51, 1  ;;  %v247_v14 = vrot.slane %v204_v59, 1  ;;  %v450_v20 = vsel %vm444_vm2, %v448_v4, %v449_v5 }
  0xcb   :  { %v244_v62 = vrot.slane %v202_v52, 1  ;;  %v246_v8 = vrot.slane %v203_v56, 1  ;;  %v457_v24 = vsel %vm456_vm4, %v446_v54, 0.0  ;;  %v99_v25 = vmul.f32 %v1167_v6, %v1161_v3 }
  0xcc   :  { %v447_v7 = vsel %vm444_vm2, %v445_v50, %v446_v54  ;;  %v100_v32 = vmul.f32 %v1187_v15, %v1173_v10  ;;  %v89_v42 = vadd.f32 %v88_v19, %v87_v18  ;;  %v459_v44 = vsel %vm82_vm1, %v450_v20, 0.0 }
  0xcd   :  { %v245_v63 = vsel %vm242_vm3, %v243_v61, %v244_v62  ;;  %v455_v23 = vsel %vm82_vm1, %v447_v7, 0.0  ;;  %v255_v30 = vsel %vm254_vm5, %v244_v62, 0.0  ;;  %v248_v37 = vsel %vm242_vm3, %v246_v8, %v247_v14 }
  0xce   :  { %v253_v27 = vsel %vm82_vm1, %v245_v63, 0.0  ;;  %v458_v43 = vadd.f32 %v457_v24, %v455_v23  ;;  %v101_v47 = vmul.f32 %v1181_v13, %v1169_v9  ;;  %v103_v48 = vsel %vm82_vm1, %v99_v25, 0.0 }
  0xcf   :  { %v705_v16 = vpop.permute.xlu0 %704  ;;  %v256_v3 = vadd.f32 %v255_v30, %v253_v27  ;;  %v257_v51 = vsel %vm82_vm1, %v248_v37, 0.0  ;;  %v289_v52 = vmul.f32 %v1213_v28, %v1157_v0  ;;  %v290_v53 = vmul.f32 %v1215_v29, %v1177_v12  ;;  %v703_v37 = vpop.permute.xlu2 %702 }
  0xd0   :  { %v715_v38 = vmul.f32 %v705_v16, %v1177_v12  ;;  %v104_v16 = vsel %vm82_vm1, %v100_v32, 0.0  ;;  %v460_v46 = vadd.f32 %v459_v44, %v458_v43  ;;  %v102_v9 = vmul.f32 %v1205_v26, %v1195_v21 }
  0xd1   :  { %v1378_v45 = vpop.permute.xlu1 %1003  ;;  %v461_v50 = vsel %vm456_vm4, %v449_v5, 0.0  ;;  %v258_v54 = vadd.f32 %v257_v51, %v256_v3  ;;  %v105_v56 = vadd.f32 %v104_v16, %v103_v48  ;;  %v106_v59 = vsel %vm82_vm1, %v101_v47, 0.0 }
  0xd2   :  { %v1006_v10 = vunpack.i.h.bf16 %v1378_v45  ;;  %v259_v61 = vsel %vm254_vm5, %v247_v14, 0.0  ;;  %v291_v62 = vmul.f32 %v1213_v28, %v1175_v11  ;;  %v293_v1 = vsel %vm82_vm1, %v289_v52, 0.0 }
  0xd3   :  { %v294_v2 = vsel %vm82_vm1, %v290_v53, 0.0  ;;  %v462_v4 = vadd.f32 %v461_v50, %v460_v46  ;;  %v108_v7 = vsel %vm82_vm1, %v102_v9, 0.0  ;;  %v260_v63 = vadd.f32 %v259_v61, %v258_v54 }
  0xd4   :  { %v1390_v57 = vmul.f32 %v1006_v10, %v715_v38  ;;  %v107_v8 = vadd.f32 %v106_v59, %v105_v56  ;;  %v295_v5 = vadd.f32 %v294_v2, %v293_v1  ;;  %v292_v19 = vmul.f32 %v1215_v29, %v1199_v22 }
  0xd5   :  { %v296_v14 = vsel %vm82_vm1, %v291_v62, 0.0  ;;  %v486_v28 = vmul.f32 %v1230_v34, %v1157_v0  ;;  %v487_v20 = vmul.f32 %v1232_v35, %v1177_v12  ;;  %v488_v29 = vmul.f32 %v1230_v34, %v1175_v11 }
  0xd6   :  { %v109_v24 = vadd.f32 %v108_v7, %v107_v8  ;;  %v297_v25 = vadd.f32 %v296_v14, %v295_v5  ;;  %v298_v30 = vsel %vm82_vm1, %v292_v19, 0.0  ;;  %v489_v43 = vmul.f32 %v1232_v35, %v1199_v22 }
  0xd7   :  { %v1355_v49 = vpop.permute.xlu0 %706  ;;  %v490_v32 = vsel %vm82_vm1, %v486_v28, 0.0  ;;  %v493_v44 = vsel %vm82_vm1, %v488_v29, 0.0  ;;  %v682_v3 = vmul.f32 %v1254_v40, %v1157_v0  ;;  %v714_v52 = vmul.f32 %v703_v37, %v1157_v0  ;;  %v733_v46 = vpop.permute.xlu2 %732 }
  0xd8   :  { %v299_v38 = vadd.f32 %v298_v30, %v297_v25  ;;  %v495_v48 = vsel %vm82_vm1, %v489_v43, 0.0  ;;  %v742_v9 = vsub.f32 %v1167_v6, %v1357_v55  ;;  %v1005_v50 = vunpack.i.l.bf16 %v1378_v45 }
  0xd9   :  { %v737_v21 = vpop.permute.xlu1 %736  ;;  %v686_v51 = vsel %vm82_vm1, %v682_v3, 0.0  ;;  %v685_v54 = vmul.f32 %v1258_v41, %v1199_v22  ;;  %v549_v59 = vsub.f32 %v1205_v26, %v1340_v17  ;;  %v521_v61 = vmul.f32 %v1312_v36, %v1199_v22 }
  0xda   :  { %v745_v18 = vsub.f32 %v1205_v26, %v737_v21  ;;  %v746_v1 = vand.u32 2147483647, %v742_v9  ;;  %v726_v2 = vmul.f32 %v1005_v50, %v714_v52  ;;  %v573_v5 = vrot.slane %v1230_v34, 4 }
  0xdb   :  { %v553_v55 = vand.u32 2147483647, %v549_v59  ;;  %v533_v45 = vmul.f32 %v1001_v60, %v521_v61  ;;  %v559_v60 = vrot.slane %v1157_v0, 4  ;;  %v562_v19 = vrot.slane %v1175_v11, 4 }
  0xdc   :  { %v749_v23 = vand.u32 2147483647, %v745_v18  ;;  %v750_v21 = vmul.f32 %v746_v1, %v726_v2  ;;  %v560_v18 = vrot.slane %v1177_v12, 4  ;;  %v563_v28 = vrot.slane %v1199_v22, 4 }
  0xdd   :  { %v569_v34 = vmul.f32 %v559_v60, %v1157_v0  ;;  %v575_v35 = vsel %vm558_vm6, %v573_v5, %v574_v58  ;;  %v585_v29 = vrot.slane %v1181_v13, 4 }
  0xdf   :  { %v709_v33 = vpop.permute.xlu0 %708  ;;  %v735_v8 = vpop.permute.xlu2 %734  ;;  %v578_v37 = vmul.f32 %v573_v5, %v569_v34  ;;  %v594_v43 = vsub.f32 %v1181_v13, %v585_v29 }
  0xe0   :  { %v717_v39 = vmul.f32 %v709_v33, %v1199_v22  ;;  %v491_v33 = vsel %vm82_vm1, %v487_v20, 0.0  ;;  %v582_v20 = vrot.slane %v1167_v6, 4 }
  0xe2   :  { %v729_v31 = vmul.f32 %v1006_v10, %v717_v39  ;;  %v492_v39 = vadd.f32 %v491_v33, %v490_v32  ;;  %v684_v10 = vmul.f32 %v1254_v40, %v1175_v11  ;;  %v571_v32 = vmul.f32 %v562_v19, %v1175_v11 }
  0xe3   :  { %v592_v0 = vsub.f32 %v1167_v6, %v582_v20 }
  0xe4   :  { %v1410_v27 = vmul.f32 %v749_v23, %v729_v31  ;;  %v494_v47 = vadd.f32 %v493_v44, %v492_v39  ;;  %v689_v56 = vsel %vm82_vm1, %v684_v10, 0.0  ;;  %v561_v23 = vsel %vm558_vm6, %v559_v60, %v560_v18 }
  0xe5   :  { %v570_v25 = vmul.f32 %v561_v23, %v1177_v12  ;;  %v716_v44 = vmul.f32 %v1355_v49, %v1175_v11  ;;  %v580_v10 = vmul.f32 %v573_v5, %v571_v32 }
  0xe6   :  { %v496_v53 = vadd.f32 %v495_v48, %v494_v47 }
  0xe7   :  { %90 = vadd.xlane.f32.xlu2 %v89_v42  ;;  %v683_v42 = vmul.f32 %v1258_v41, %v1177_v12  ;;  %v743_v41 = vsub.f32 %v1187_v15, %v733_v46  ;;  %v579_v39 = vmul.f32 %v575_v35, %v570_v25  ;;  %v744_v12 = vsub.f32 %v1181_v13, %v735_v8 }
  0xe8   :  { %v1454_v14 = vpop.permute.xlu2 %209 }
  0xe9   :  { %v687_v16 = vsel %vm82_vm1, %v683_v42, 0.0  ;;  %v747_v36 = vand.u32 2147483647, %v743_v41  ;;  %v748_v9 = vand.u32 2147483647, %v744_v12  ;;  %v222_v25 = vsel %vm221_vm9, %v1454_v14, 0.0 }
  0xea   :  { %v688_v31 = vadd.f32 %v687_v16, %v686_v51  ;;  %v598_v16 = vand.u32 2147483647, %v594_v43 }
  0xeb   :  { %v1447_v17 = vmul.f32 %v747_v36, %v1390_v57  ;;  %v583_v57 = vrot.slane %v1187_v15, 4 }
  0xec   :  { %v690_v62 = vadd.f32 %v689_v56, %v688_v31  ;;  %v602_v59 = vmul.f32 %v598_v16, %v580_v10 }
  0xed   :  { %v584_v30 = vsel %vm558_vm6, %v582_v20, %v583_v57 }
  0xee   :  { %463 = vadd.xlane.f32.xlu1 %v462_v4  ;;  %v691_v4 = vsel %vm82_vm1, %v685_v54, 0.0  ;;  %v593_v42 = vsub.f32 %v1187_v15, %v584_v30  ;;  %v728_v54 = vmul.f32 %v1005_v50, %v716_v44  ;;  %v644_v2 = vrot.slane %v602_v59, 4 }
  0xef   :  { %261 = vadd.xlane.f32.xlu2 %v260_v63  ;;  %v692_v7 = vadd.f32 %v691_v4, %v690_v62  ;;  %v557_v63 = vmul.f32 %v553_v55, %v533_v45 }
  0xf0   :  { %v597_v48 = vand.u32 2147483647, %v593_v42  ;;  %v752_v49 = vmul.f32 %v748_v9, %v728_v54 }
  0xf2   :  { %110 = vadd.xlane.f32.xlu0 %v109_v24  ;;  %v564_v24 = vsel %vm558_vm6, %v562_v19, %v563_v28  ;;  %v601_v46 = vmul.f32 %v597_v48, %v579_v39 }
  0xf3   :  { %v572_v33 = vmul.f32 %v564_v24, %v1199_v22  ;;  %v596_v22 = vand.u32 2147483647, %v592_v0 }
  0xf4   :  { %v642_v11 = vrot.slane %v601_v46, 4 }
  0xf5   :  { %v581_v51 = vmul.f32 %v575_v35, %v572_v33  ;;  %v600_v31 = vmul.f32 %v596_v22, %v578_v37 }
  0xf6   :  { %v653_v41 = vsel %vm652_vm7, %v642_v11, 0.0 }
  0xf7   :  { %300 = vadd.xlane.f32.xlu2 %v299_v38  ;;  %v586_v38 = vrot.slane %v1205_v26, 4  ;;  %v641_v62 = vrot.slane %v600_v31, 4 }
  0xf9   :  { %v587_v3 = vsel %vm558_vm6, %v585_v29, %v586_v38  ;;  %v643_v1 = vsel %vm558_vm6, %v641_v62, %v642_v11 }
  0xfa   :  { %v595_v47 = vsub.f32 %v1205_v26, %v587_v3 }
  0xff   :  { %497 = vadd.xlane.f32.xlu2 %v496_v53  ;;  %v599_v53 = vand.u32 2147483647, %v595_v47 }
 0x101   :  { %v603_v61 = vmul.f32 %v599_v53, %v581_v51 }
 0x103   :  { %v645_v4 = vrot.slane %v603_v61, 4 }
 0x105   :  { %v646_v50 = vsel %vm558_vm6, %v644_v2, %v645_v4  ;;  %v657_v18 = vsel %vm652_vm7, %v645_v4, 0.0 }
 0x106   :  { %768 = vrot.lane.b32.xlu0 %v750_v21, %s1123_s5  ;;  %v655_v8 = vsel %vm82_vm1, %v646_v50, 0.0 }
 0x107   :  { %614 = vrot.lane.b32.xlu1 %v557_v63, %s1122_s4  ;;  %693 = vadd.xlane.f32.xlu2 %v692_v7  ;;  %v651_v7 = vsel %vm82_vm1, %v643_v1, 0.0 }
 0x108   :  { %v412_v52 = vpop.permute.xlu2 %411  ;;  %v212_v56 = vpop.permute.xlu0 %211  ;;  %v654_v63 = vadd.f32 %v653_v41, %v651_v7 }
 0x109   :  { %v424_v36 = vsel %vm423_vm8, %v412_v52, 0.0  ;;  %v223_v34 = vsel %vm221_vm9, %v212_v56, 0.0 }
 0x10a   :  { %v656_v60 = vadd.f32 %v655_v8, %v654_v63  ;;  %v224_v29 = vadd.f32 %v223_v34, %v222_v25 }
 0x10c   :  { %v658_v57 = vadd.f32 %v657_v18, %v656_v60 }
 0x110   :  { %v416_v55 = vpop.permute.xlu2 %415 }
 0x111   :  { %v427_v19 = vsel %vm423_vm8, %v416_v55, 0.0 }
 0x116   :  { %v214_v58 = vpop.permute.xlu1 %213 }
 0x117   :  { %v225_v30 = vsel %vm221_vm9, %v214_v58, 0.0 }
 0x118   :  { %v418_v28 = vpop.permute.xlu2 %417  ;;  %v226_v33 = vadd.f32 %v225_v30, %v224_v29 }
 0x119   :  { %v429_v23 = vsel %vm423_vm8, %v418_v28, 0.0 }
 0x11f   :  { %772 = vrot.lane.b32.xlu2 %v752_v49, %s1123_s5 }
 0x120   :  { %v414_v45 = vpop.permute.xlu0 %413 }
 0x121   :  { %v425_v21 = vsel %vm423_vm8, %v414_v45, 0.0 }
 0x122   :  { %v426_v5 = vadd.f32 %v425_v21, %v424_v36 }
 0x124   :  { %v428_v20 = vadd.f32 %v427_v19, %v426_v5 }
 0x126   :  { %v430_v35 = vadd.f32 %v429_v23, %v428_v20 }
 0x12e   :  { %v216_v24 = vpop.permute.xlu1 %215 }
 0x12f   :  { %v227_v32 = vsel %vm221_vm9, %v216_v24, 0.0 }
 0x130   :  { %431 = vadd.xlane.f32.xlu0 %v430_v35  ;;  %v228_v37 = vadd.f32 %v227_v32, %v226_v33 }
 0x131   :  { %659 = vadd.xlane.f32.xlu1 %v658_v57 }
 0x132   :  { %v609_v38 = vpop.permute.xlu0 %608 }
 0x133   :  { %v621_v12 = vsel %vm620_vm10, %v609_v38, 0.0 }
 0x136   :  { %v611_v39 = vpop.permute.xlu1 %610 }
 0x137   :  { %v622_v43 = vsel %vm620_vm10, %v611_v39, 0.0 }
 0x138   :  { %v623_v3 = vadd.f32 %v622_v43, %v621_v12 }
 0x139   :  { %229 = vadd.xlane.f32.xlu1 %v228_v37 }
 0x13a   :  { %v613_v42 = vpop.permute.xlu0 %612 }
 0x13b   :  { %v624_v44 = vsel %vm620_vm10, %v613_v42, 0.0 }
 0x13c   :  { %v625_v14 = vadd.f32 %v624_v44, %v623_v3 }
 0x152   :  { %770 = vrot.lane.b32.xlu1 %v1447_v17, %s1123_s5 }
 0x15a   :  { %v91_v10 = vpop.xlane.xlu2 %90 }
 0x15b   :  { %v92_v16 = vrot.slane %v91_v10, 4 }
 0x15d   :  { %v93_v53 = vadd.f32 %v92_v16, %v91_v10  ;;  %v1020_v16 = vld [vmem:[#allocation7 + $0x18] sm:$0xff] }
 0x15f   :  { %v94_v31 = vrot.slane %v93_v53, 2 }
 0x161   :  { %v464_v0 = vpop.xlane.xlu1 %463  ;;  %v95_v9 = vadd.f32 %v94_v31, %v93_v53  ;;  %v758_v53 = vsub.f32 %v1187_v15, %v1167_v6 }
 0x162   :  { %v262_v11 = vpop.xlane.xlu2 %261 }
 0x163   :  { %v96_v56 = vrot.slane %v95_v9, 1  ;;  %v263_v2 = vrot.slane %v262_v11, 4 }
 0x165   :  { %v111_v51 = vpop.xlane.xlu0 %110  ;;  %v97_v61 = vadd.f32 %v96_v56, %v95_v9  ;;  %v264_v7 = vadd.f32 %v263_v2, %v262_v11  ;;  %v760_v9 = vand.u32 2147483647, %v758_v53 }
 0x166   :  { %v112_v52 = vrot.slane %v111_v51, 4 }
 0x167   :  { %942 = vpush %v97_v61  ;;  %v265_v21 = vrot.slane %v264_v7, 2 }
 0x168   :  { %v113_v17 = vadd.f32 %v112_v52, %v111_v51  ;;  %v1019_v51 = vld [vmem:[#allocation7 + $0x10] sm:$0xff] }
 0x169   :  { %v266_v28 = vadd.f32 %v265_v21, %v264_v7  ;;  %v755_v52 = vmul.f32 %v1020_v16, %v1019_v51 }
 0x16a   :  { %v114_v46 = vrot.slane %v113_v17, 2  ;;  %v301_v1 = vpop.xlane.xlu2 %300 }
 0x16b   :  { %v302_v4 = vrot.slane %v301_v1, 4  ;;  %v267_v24 = vrot.slane %v266_v28, 1 }
 0x16c   :  { %v115_v54 = vadd.f32 %v114_v46, %v113_v17  ;;  %v759_v17 = vsub.f32 %v1205_v26, %v1181_v13  ;;  %v757_v46 = vmul.f32 %v1254_v40, %v755_v52 }
 0x16d   :  { %v303_v50 = vadd.f32 %v302_v4, %v301_v1  ;;  %v268_v38 = vadd.f32 %v267_v24, %v266_v28 }
 0x16e   :  { %v116_v59 = vrot.slane %v115_v54, 1 }
 0x16f   :  { %v304_v36 = vrot.slane %v303_v50, 2 }
 0x170   :  { %v117_v62 = vadd.f32 %v116_v59, %v115_v54  ;;  %v761_v54 = vand.u32 2147483647, %v759_v17 }
 0x171   :  { %v305_v23 = vadd.f32 %v304_v36, %v303_v50 }
 0x172   :  { %944 = vpush %v117_v62  ;;  %v498_v5 = vpop.xlane.xlu2 %497  ;;  %v763_v59 = vmul.f32 %v761_v54, %v757_v46 }
 0x173   :  { %v499_v58 = vrot.slane %v498_v5, 4  ;;  %v306_v29 = vrot.slane %v305_v23, 1 }
 0x174   :  { %v798_v62 = vsel %vm82_vm1, %v763_v59, 0.0 }
 0x175   :  { %v500_v34 = vadd.f32 %v499_v58, %v498_v5  ;;  %v307_v42 = vadd.f32 %v306_v29, %v305_v23 }
 0x177   :  { %v501_v33 = vrot.slane %v500_v34, 2 }
 0x178   :  { %v1487_v49 = vpop.permute.xlu0 %768 }
 0x179   :  { %v615_v47 = vpop.permute.xlu1 %614  ;;  %v502_v12 = vadd.f32 %v501_v33, %v500_v34 }
 0x17a   :  { %v626_v22 = vsel %vm620_vm10, %v615_v47, 0.0  ;;  %v694_v11 = vpop.xlane.xlu2 %693 }
 0x17b   :  { %v627_v48 = vadd.f32 %v626_v22, %v625_v14  ;;  %v503_v3 = vrot.slane %v502_v12, 1  ;;  %v1017_v22 = vld [vmem:[#allocation7] sm:$0xff]  ;;  %v695_v2 = vrot.slane %v694_v11, 4 }
 0x17d   :  { %628 = vadd.xlane.f32.xlu0 %v627_v48  ;;  %v504_v47 = vadd.f32 %v503_v3, %v502_v12  ;;  %v1018_v48 = vld [vmem:[#allocation7 + $0x8] sm:$0xff]  ;;  %v696_v13 = vadd.f32 %v695_v2, %v694_v11 }
 0x17e   :  { %v754_v10 = vmul.f32 %v1018_v48, %v1017_v22 }
 0x17f   :  { %v697_v26 = vrot.slane %v696_v13, 2 }
 0x180   :  { %v756_v31 = vmul.f32 %v1254_v40, %v754_v10 }
 0x182   :  { %v762_v56 = vmul.f32 %v760_v9, %v756_v31  ;;  %v773_v28 = vpop.permute.xlu2 %772 }
 0x184   :  { %v797_v61 = vsel %vm82_vm1, %v762_v56, 0.0 }
 0x185   :  { %v799_v1 = vadd.f32 %v798_v62, %v797_v61 }
 0x191   :  { %774 = vrot.lane.b32.xlu0 %v1410_v27, %s1123_s5  ;;  %v465_v27 = vrot.slane %v464_v0, 4 }
 0x193   :  { %v466_v8 = vadd.f32 %v465_v27, %v464_v0 }
 0x195   :  { %v467_v20 = vrot.slane %v466_v8, 2 }
 0x197   :  { %v468_v32 = vadd.f32 %v467_v20, %v466_v8 }
 0x198   :  { %s1499_s6 = spop %942 }
 0x199   :  { %v469_v43 = vrot.slane %v468_v32, 1  ;;  %s119_s19 = smul.f32 2.0, %s1499_s6  ;;  %p831_p0 = scmp.eq.f32.partialorder %s1499_s6, 0.0 }
 0x19b   :  { %v470_v14 = vadd.f32 %v469_v43, %v468_v32  ;;  %p1530_p1 = scmp.eq.f32.partialorder %s119_s19, 0.0 }
 0x19c   :  { %s832_s21 = scalar_select %p831_p0, 1.0, %s1499_s6 }
 0x19d   :  { %s1692_s19 = smov (%p1530_p1, %s119_s19), 1.0 }
 0x1a3   :  { %v432_v45 = vpop.xlane.xlu0 %431  ;;  %s1502_s7 = spop %944 }
 0x1a4   :  { %v1489_v55 = vpop.xlane.xlu1 %659  ;;  %v433_v41 = vrot.slane %v432_v45, 4 }
 0x1a5   :  { %v661_v6 = vrot.slane %v1489_v55, 4 }
 0x1a6   :  { %v434_v63 = vadd.f32 %v433_v41, %v432_v45  ;;  %v698_v41 = vadd.f32 %v697_v26, %v696_v13 }
 0x1a7   :  { %v662_v15 = vadd.f32 %v661_v6, %v1489_v55 }
 0x1a8   :  { %v435_v19 = vrot.slane %v434_v63, 2  ;;  %v699_v55 = vrot.slane %v698_v41, 1 }
 0x1a9   :  { %v663_v40 = vrot.slane %v662_v15, 2 }
 0x1aa   :  { %v436_v25 = vadd.f32 %v435_v19, %v434_v63  ;;  %v700_v58 = vadd.f32 %v699_v55, %v698_v41  ;;  %v781_v19 = vsel %vm780_vm11, %v1487_v49, 0.0  ;;  %v1542_v49 = vstv %s832_s21 }
 0x1ab   :  { %v664_v27 = vadd.f32 %v663_v40, %v662_v15  ;;  %1007 = vrcp.f32 %v1542_v49  ;;  %v845_v46 = vand.u32 2147483648, %v1542_v49  ;;  %vm839_vm12 = vweird.f32 %v1542_v49 }
 0x1ac   :  { %v230_v60 = vpop.xlane.xlu1 %229  ;;  %v437_v39 = vrot.slane %v436_v25, 1  ;;  %v843_v6 = vand.u32 2147483647, %v1542_v49 }
 0x1ad   :  { %v231_v18 = vrot.slane %v230_v60, 4  ;;  %v665_v63 = vrot.slane %v664_v27, 1  ;;  %v846_v13 = vor.u32 1.1754944e-38, %v845_v46 }
 0x1ae   :  { %v438_v44 = vadd.f32 %v437_v39, %v436_v25  ;;  %v1549_v25 = vstv %s1692_s19  ;;  %vm1629_vm7 = vcmp.eq.f32.partialorder %v843_v6, 8.507059e+37 }
 0x1af   :  { %v232_v57 = vadd.f32 %v231_v18, %v230_v60  ;;  %v666_v18 = vadd.f32 %v665_v63, %v664_v27  ;;  %1009 = vrcp.f32 %v1549_v25  ;;  %v825_v61 = vand.u32 2147483648, %v1549_v25 }
 0x1b0   :  { %vm819_vm14 = vweird.f32 %v1549_v25  ;;  %v823_v15 = vand.u32 2147483647, %v1549_v25 }
 0x1b1   :  { %v233_v35 = vrot.slane %v232_v57, 2  ;;  %v1563_v32 = vpop.eup %1007 }
 0x1b2   :  { %v835_v39 = vmul.f32 %v1563_v32, %v1542_v49  ;;  %vm840_vm13 = vweird.f32 %v1563_v32  ;;  %vm824_vm8 = vcmp.eq.f32.partialorder %v823_v15, 8.507059e+37 }
 0x1b3   :  { %v234_v30 = vadd.f32 %v233_v35, %v232_v57  ;;  %v784_v57 = vsel %vm780_vm11, %v773_v28, 0.0  ;;  %vm1601_vm0 = vmor %vm839_vm12, %vm840_vm13 }
 0x1b4   :  { %v836_v12 = vsub.f32 1.0, %v835_v39 }
 0x1b5   :  { %v235_v37 = vrot.slane %v234_v30, 1 }
 0x1b6   :  { %v837_v10 = vmul.f32 %v1563_v32, %v836_v12 }
 0x1b7   :  { %v236_v0 = vadd.f32 %v235_v37, %v234_v30 }
 0x1b8   :  { %v838_v54 = vadd.f32 %v1563_v32, %v837_v10 }
 0x1b9   :  { %946 = vpush %v236_v0 }
 0x1ba   :  { %948 = vpush %v268_v38  ;;  %v1569_v38 = vpop.eup %1009  ;;  %v842_v63 = vsel %vm1601_vm0, %v1563_v32, %v838_v54 }
 0x1bb   :  { %950 = vpush %v307_v42  ;;  %800 = vadd.xlane.f32.xlu0 %v799_v1  ;;  %v815_v43 = vmul.f32 %v1569_v38, %v1549_v25  ;;  %vm820_vm15 = vweird.f32 %v1569_v38  ;;  %v847_v32 = vsel %vm1629_vm7, %v846_v13, %v842_v63 }
 0x1bc   :  { %952 = vpush %v438_v44  ;;  %vm1608_vm3 = vmor %vm819_vm14, %vm820_vm15 }
 0x1bd   :  { %954 = vpush %v470_v14  ;;  %v816_v22 = vsub.f32 1.0, %v815_v43 }
 0x1be   :  { %956 = vpush %v504_v47 }
 0x1bf   :  { %v817_v31 = vmul.f32 %v1569_v38, %v816_v22 }
 0x1c1   :  { %v818_v2 = vadd.f32 %v1569_v38, %v817_v31 }
 0x1c4   :  { %v771_v8 = vpop.permute.xlu1 %770 }
 0x1c5   :  { %v782_v60 = vsel %vm780_vm11, %v771_v8, 0.0 }
 0x1c6   :  { %v783_v20 = vadd.f32 %v782_v60, %v781_v19 }
 0x1c8   :  { %v785_v34 = vadd.f32 %v784_v57, %v783_v20 }
 0x1ea   :  { %s1504_s8 = spop %946 }
 0x1eb   :  { %s1506_s9 = spop %948 }
 0x1ec   :  { %s270_s10 = sadd.f32 %s1506_s9, %s1504_s8  ;;  %s1511_s11 = spop %950 }
 0x1ed   :  { %s1513_s12 = spop %952  ;;  %p852_p2 = scmp.eq.f32.partialorder %s1511_s11, 0.0 }
 0x1ee   :  { %s1515_s13 = spop %954  ;;  %s271_s26 = smul.f32 0.5, %s270_s10 }
 0x1ef   :  { %s472_s14 = sadd.f32 %s1515_s13, %s1513_s12  ;;  %s1520_s15 = spop %956 }
 0x1f0   :  { %v629_v4 = vpop.xlane.xlu0 %628  ;;  %p873_p3 = scmp.eq.f32.partialorder %s1520_s15, 0.0 }
 0x1f1   :  { %v630_v45 = vrot.slane %v629_v4, 4  ;;  %s853_s23 = scalar_select %p852_p2, 1.0, %s1511_s11 }
 0x1f2   :  { %s874_s24 = scalar_select %p873_p3, 1.0, %s1520_s15 }
 0x1f3   :  { %v631_v7 = vadd.f32 %v630_v45, %v629_v4  ;;  %v1559_v30 = vstv %s853_s23  ;;  %s473_s27 = smul.f32 0.5, %s472_s14  ;;  %s1124_s11 = smov [#allocation8]  }
 0x1f4   :  { %v1561_v29 = vstv %s874_s24  ;;  %1011 = vrcp.f32 %v1559_v30  ;;  %vm860_vm1 = vweird.f32 %v1559_v30  ;;  %v866_v41 = vand.u32 2147483648, %v1559_v30 }
 0x1f5   :  { %v632_v50 = vrot.slane %v631_v7, 2  ;;  %1013 = vrcp.f32 %v1561_v29  ;;  %vm881_vm4 = vweird.f32 %v1561_v29  ;;  %v885_v19 = vand.u32 2147483647, %v1561_v29 }
 0x1f7   :  { %v633_v21 = vadd.f32 %v632_v50, %v631_v7  ;;  %v826_v7 = vor.u32 1.1754944e-38, %v825_v61  ;;  %vm886_vm13 = vcmp.eq.f32.partialorder %v885_v19, 8.507059e+37 }
 0x1f9   :  { %v634_v36 = vrot.slane %v633_v21, 1 }
 0x1fa   :  { %v1574_v42 = vpop.eup %1011 }
 0x1fb   :  { %v635_v5 = vadd.f32 %v634_v36, %v633_v21  ;;  %v1578_v44 = vpop.eup %1013  ;;  %v856_v14 = vmul.f32 %v1574_v42, %v1559_v30  ;;  %vm861_vm2 = vweird.f32 %v1574_v42  ;;  %v864_v36 = vand.u32 2147483647, %v1559_v30 }
 0x1fc   :  { %v877_v48 = vmul.f32 %v1578_v44, %v1561_v29  ;;  %vm882_vm5 = vweird.f32 %v1578_v44  ;;  %vm1620_vm6 = vmor %vm860_vm1, %vm861_vm2 }
 0x1fd   :  { %958 = vpush %v635_v5  ;;  %v857_v16 = vsub.f32 1.0, %v856_v14  ;;  %v887_v5 = vand.u32 2147483648, %v1561_v29  ;;  %vm1635_vm9 = vmor %vm881_vm4, %vm882_vm5 }
 0x1fe   :  { %960 = vpush %v666_v18  ;;  %v878_v9 = vsub.f32 1.0, %v877_v48 }
 0x1ff   :  { %962 = vpush %v700_v58  ;;  %v858_v11 = vmul.f32 %v1574_v42, %v857_v16  ;;  %v822_v58 = vsel %vm1608_vm3, %v1569_v38, %v818_v2  ;;  %v888_v49 = vor.u32 1.1754944e-38, %v887_v5 }
 0x200   :  { %v879_v40 = vmul.f32 %v1578_v44, %v878_v9  ;;  %v827_v30 = vsel %vm824_vm8, %v826_v7, %v822_v58 }
 0x201   :  { %v859_v21 = vadd.f32 %v1574_v42, %v858_v11 }
 0x202   :  { %v880_v18 = vadd.f32 %v1578_v44, %v879_v40 }
 0x203   :  { %v775_v23 = vpop.permute.xlu0 %774 }
 0x204   :  { %v786_v35 = vsel %vm780_vm11, %v775_v23, 0.0  ;;  %vm865_vm11 = vcmp.eq.f32.partialorder %v864_v36, 8.507059e+37  ;;  %v884_v29 = vsel %vm1635_vm9, %v1578_v44, %v880_v18 }
 0x205   :  { %v787_v24 = vadd.f32 %v786_v35, %v785_v34  ;;  %v863_v34 = vsel %vm1620_vm6, %v1574_v42, %v859_v21  ;;  %v867_v35 = vor.u32 1.1754944e-38, %v866_v41  ;;  %v889_v39 = vsel %vm886_vm13, %v888_v49, %v884_v29 }
 0x207   :  { %788 = vadd.xlane.f32.xlu1 %v787_v24 }
 0x22e   :  { %s1522_s16 = spop %958  ;;  %v801_v37 = vpop.xlane.xlu0 %800 }
 0x22f   :  { %s1524_s17 = spop %960  ;;  %v802_v0 = vrot.slane %v801_v37, 4 }
 0x230   :  { %s668_s18 = sadd.f32 %s1524_s17, %s1522_s16  ;;  %s1538_s22 = spop %962 }
 0x231   :  { %p894_p4 = scmp.eq.f32.partialorder %s1538_s22, 0.0  ;;  %v803_v47 = vadd.f32 %v802_v0, %v801_v37 }
 0x232   :  { %s669_s29 = smul.f32 0.5, %s668_s18  ;;  %s924_s18 = sshll.u32 %s1679_s3, 4  ;;  %s925_s18 = int_to_ptr.hbm [resolvable:$true] %s924_s18 }
 0x233   :  { %s895_s25 = scalar_select %p894_p4, 1.0, %s1538_s22  ;;  %v804_v52 = vrot.slane %v803_v47, 2 }
 0x235   :  { %v1566_v33 = vstv %s895_s25  ;;  %v805_v62 = vadd.f32 %v804_v52, %v803_v47 }
 0x236   :  { %1015 = vrcp.f32 %v1566_v33  ;;  %v908_v24 = vand.u32 2147483648, %v1566_v33  ;;  %vm902_vm12 = vweird.f32 %v1566_v33  ;;  %v906_v25 = vand.u32 2147483647, %v1566_v33 }
 0x237   :  { %v806_v50 = vrot.slane %v805_v62, 1 }
 0x238   :  { %v909_v38 = vor.u32 1.1754944e-38, %v908_v24  ;;  %vm907_vm15 = vcmp.eq.f32.partialorder %v906_v25, 8.507059e+37 }
 0x239   :  { %v807_v23 = vadd.f32 %v806_v50, %v805_v62 }
 0x23c   :  { %v1580_v3 = vpop.eup %1015 }
 0x23d   :  { %v898_v51 = vmul.f32 %v1580_v3, %v1566_v33  ;;  %vm903_vm10 = vweird.f32 %v1580_v3  ;;  %v868_v33 = vsel %vm865_vm11, %v867_v35, %v863_v34 }
 0x23e   :  { %vm904_vm14 = vmor %vm902_vm12, %vm903_vm10 }
 0x23f   :  { %v899_v56 = vsub.f32 1.0, %v898_v51 }
 0x241   :  { %v900_v27 = vmul.f32 %v1580_v3, %v899_v56 }
 0x243   :  { %v901_v57 = vadd.f32 %v1580_v3, %v900_v27 }
 0x245   :  { %v905_v37 = vsel %vm904_vm14, %v1580_v3, %v901_v57 }
 0x246   :  { %v910_v0 = vsel %vm907_vm15, %v909_v38, %v905_v37 }
 0x27a   :  { %v789_v53 = vpop.xlane.xlu1 %788 }
 0x27b   :  { %v790_v17 = vrot.slane %v789_v53, 4 }
 0x27d   :  { %v791_v59 = vadd.f32 %v790_v17, %v789_v53 }
 0x27f   :  { %v792_v1 = vrot.slane %v791_v59, 2 }
 0x281   :  { %v793_v4 = vadd.f32 %v792_v1, %v791_v59 }
 0x283   :  { %v794_v55 = vrot.slane %v793_v4, 1 }
 0x285   :  { %v795_v28 = vadd.f32 %v794_v55, %v793_v4 }
 0x287   :  { %964 = vpush %v795_v28 }
 0x288   :  { %966 = vpush %v807_v23 }
 0x289   :  { %968 = vpush %v827_v30 }
 0x28a   :  { %970 = vpush %v847_v32 }
 0x28b   :  { %972 = vpush %v868_v33 }
 0x28c   :  { %974 = vpush %v889_v39 }
 0x28d   :  { %976 = vpush %v910_v0 }
 0x2b8   :  { %s965_s1 = spop %964 }
 0x2b9   :  { %s967_s0 = spop %966 }
 0x2ba   :  { %s809_s2 = sadd.f32 %s967_s0, %s965_s1  ;;  %s969_s28 = spop %968 }
 0x2bb   :  { %s971_s30 = spop %970  ;;  %s829_s4 = smul.f32 %s969_s28, %s1502_s7 }
 0x2bc   :  { %s973_s5 = spop %972  ;;  %s810_s19 = smul.f32 0.5, %s809_s2 }
 0x2bd   :  { %s849_s21 = smul.f32 %s971_s30, %s271_s26  ;;  %s975_s8 = spop %974 }
 0x2be   :  { %s870_s23 = smul.f32 %s973_s5, %s473_s27  ;;  %s977_s10 = spop %976 }
 0x2bf   :  { %s1694_s21 = smov (%p831_p0, %s849_s21), 0.0  ;;  %s891_s9 = smul.f32 %s975_s8, %s669_s29 }
 0x2c0   :  { %s1696_s23 = smov (%p852_p2, %s870_s23), 0.0  ;;  %s912_s13 = smul.f32 %s977_s10, %s810_s19 }
 0x2c1   :  { %s872_s12 = sadd.f32 %s1696_s23, %s1694_s21  ;;  %s1698_s9 = smov (%p873_p3, %s891_s9), 0.0 }
 0x2c2   :  { %s1700_s13 = smov (%p894_p4, %s912_s13), 0.0  ;;  %s1702_s4 = smov (%p1530_p1, %s829_s4), 0.0 }
 0x2c3   :  { %s893_s14 = sadd.f32 %s1698_s9, %s872_s12 }
 0x2c5   :  { %s914_s7 = sadd.f32 %s1700_s13, %s893_s14 }
 0x2c7   :  { %s915_s6 = smul.f32 0.5, %s914_s7 }
 0x2c9   :  { %s916_s24 = sadd.f32 %s915_s6, %s1702_s4 }
 0x2cb   :  { %918 = sst [smem:[#allocation8]] %s916_s24 }
 0x2cc   :  { %927 = dma.smem_to_hbm %s1124_s11, 16, %s925_s18, [#allocation4]  }
 0x2cd   :  { %1109 = dma.done.wait [#allocation4], 16  }
 0x2ce   :  { %1110 = vsyncadd [#allocation4], 4294967280 }
 0x2cf   :  { %932 = sfence }
 0x2d0   :  { %933 = vsyncpa [#allocation3], 1 }
 0x2d1   :  { %934 = vsyncpa [#allocation6], 1 }
 0x2d2   :  { %935 = vsyncpa [#allocation4], 1 }

</bundles_post_ra>
